<compile_context>
chip_gen: v7x
topology: tpu7x:2x2x1
jax: 0.10.0
libtpu: 0.0.40
codegen_flags: <defaults>
</compile_context>

<pallas_src>
import jax
import jax.numpy as jnp
from jax.experimental import pallas as pl
from jax.experimental.pallas import tpu as pltpu


def _round_up(x, m):
    return (x + m - 1) // m * m


def _choose_tb(B, max_tb=8):
    """Largest TB <= max_tb that divides B while leaving >= 2 grid steps."""
    for tb in range(min(B, max_tb), 0, -1):
        if B % tb == 0 and B // tb >= 2:
            return tb
    return B  # B == 1 (or no divisor leaves two steps): single grid step.


def _make_convblock_kernel(H, W, Cin, Cout, TB, OFF, P, LP, Lv):
    S = H * W
    Cmax = max(Cin, Cout)
    EPS = 1e-8
    SLOPE = 0.2
    f32 = jnp.float32

    def kernel(x_ref, m_ref, w1_ref, b1_ref, w2_ref, b2_ref, out_ref, pad_ref):
        # x_ref  : (TB, Cin, S)    input images (native dtype)
        # m_ref  : (3, Lv) f32     [dx=-1 col mask, dx=+1 col mask, interior mask]
        # w*_ref : (3, 3, Cout, C) scale-folded weights; w[ky, kx] is (Cout, C)
        # b*_ref : (Cout, 1)
        # out_ref: (TB, Cout, S)
        # pad_ref: (Cmax, LP)      packed, zero-padded flat activations
        col_m1 = m_ref[0:1, :]                     # (1, Lv) valid cols for dx = -1
        col_p1 = m_ref[1:2, :]                     # (1, Lv) valid cols for dx = +1
        interior = m_ref[2:3, :]                   # (1, Lv) 1 in-image, 0 in gaps
        col_masks = (col_m1, None, col_p1)
        mean_vec = jnp.full((1, Cout), 1.0 / Cout, f32)

        def leaky(v):
            return jnp.maximum(v, SLOPE * v)       # exact LeakyReLU for slope in (0,1)

        def pixelnorm(v):                          # (Cout, Lv); channel axis = 0
            mean_sq = jnp.dot(mean_vec, v * v, preferred_element_type=f32)  # (1, Lv)
            return v * jax.lax.rsqrt(mean_sq + EPS)

        def conv3x3(c_in, w_ref, b_ref):
            # 9 MXU dots against statically lane-shifted views of the packed pad
            # buffer. Row-boundary taps read the zeroed head/gap/tail lanes; column
            # boundary taps are killed by the precomputed dx masks.
            total = None
            for kx, dx in enumerate((-1, 0, 1)):
                part = None
                for ky, dy in enumerate((-1, 0, 1)):
                    start = OFF + dy * W + dx                       # static, >= 0
                    a = pad_ref[0:c_in, start:start + Lv]           # (c_in, Lv)
                    d = jnp.dot(w_ref[ky, kx], a,
                                preferred_element_type=f32)         # (Cout, Lv)
                    part = d if part is None else part + d
                cm = col_masks[kx]
                if cm is not None:
                    part = part * cm
                total = part if total is None else total + part
            return total + b_ref[...]                               # + (Cout, 1)

        # Zero the non-interior lanes (head slab + inter-image gaps + tail) every
        # step. This is only Cmax * (OFF + TB*(P-S)) elements and stays correct when
        # the batch axis is split across two TensorCores (each core has its own
        # scratch, so a program_id()==0-only init would be unsafe).
        pad_ref[:, 0:OFF] = jnp.zeros((Cmax, OFF), f32)
        for t in range(TB):
            g0 = OFF + t * P + S
            pad_ref[:, g0:g0 + (P - S)] = jnp.zeros((Cmax, P - S), f32)

        # ---- conv1 + leaky + pixelnorm ----
        for t in range(TB):
            base = OFF + t * P                     # 128-aligned interior start
            pad_ref[0:Cin, base:base + S] = x_ref[t].astype(f32)
        y1 = pixelnorm(leaky(conv3x3(Cin, w1_ref, b1_ref)))          # (Cout, Lv)

        # ---- conv2 + leaky + pixelnorm ----
        # One lane-dense store refills all image interiors and re-zeroes the gaps
        # (interior mask) in a single pass; head/tail slabs keep their zeros.
        pad_ref[0:Cout, OFF:OFF + Lv] = y1 * interior
        y2 = pixelnorm(leaky(conv3x3(Cout, w2_ref, b2_ref)))         # (Cout, Lv)

        for t in range(TB):
            out_ref[t] = y2[:, t * P:t * P + S].astype(out_ref.dtype)

    return kernel


@jax.jit
def conv_block_forward(x_nchw, w1, b1, w2, b2):
    """ConvBlock forward.

    x_nchw: (B, Cin, H, W)   (PyTorch NCHW)
    w1:     (Cout, Cin, 3, 3)  OIHW; w2: (Cout, Cout, 3, 3) OIHW
    b1, b2: (Cout,)
    returns (B, Cout, H, W)
    """
    B, Cin, H, W = x_nchw.shape
    Cout = w1.shape[0]
    S = H * W
    Cmax = max(Cin, Cout)
    TB = _choose_tb(B)

    # Packed flat-lane geometry: image t of a grid step lives at lanes
    # [OFF + t*P, OFF + t*P + S). OFF and P are 128-aligned; head/tail slabs and the
    # inter-image gaps (all >= W+1 lanes) are kept at zero so row-boundary taps read
    # zeros. Each tap view / conv result spans Lv = (TB-1)*P + S lanes.
    OFF = _round_up(W + 1, 128)
    P = _round_up(S + W + 1, 128)
    LP = OFF + TB * P
    Lv = (TB - 1) * P + S

    # Fold the WS scale into the weights (conv(x*s, W) == conv(x, s*W)) and
    # rearrange OIHW -> (kh, kw, Cout, Cin) so w[ky, kx] is a ready MXU lhs matrix.
    scale1 = (2.0 / (Cin * 9)) ** 0.5
    scale2 = (2.0 / (Cout * 9)) ** 0.5
    w1k = jnp.transpose(w1.astype(jnp.float32) * scale1, (2, 3, 0, 1))
    w2k = jnp.transpose(w2.astype(jnp.float32) * scale2, (2, 3, 0, 1))
    b1k = b1.astype(jnp.float32).reshape(Cout, 1)
    b2k = b2.astype(jnp.float32).reshape(Cout, 1)

    # Column / interior masks, hoisted out of the kernel body into a tiny constant
    # input. For a view lane v: image-local position = v % P, column = (v % P) % W.
    v = jnp.arange(Lv, dtype=jnp.int32)
    col = (v % P) % W
    masks = jnp.stack([
        (col != 0).astype(jnp.float32),            # dx = -1 valid columns
        (col != (W - 1)).astype(jnp.float32),      # dx = +1 valid columns
        ((v % P) < S).astype(jnp.float32),         # in-image (vs inter-image gap)
    ])                                             # (3, Lv)

    x_flat = x_nchw.reshape(B, Cin, S)             # free reshape; cast in-kernel

    kernel = _make_convblock_kernel(H, W, Cin, Cout, TB, OFF, P, LP, Lv)

    # VMEM budget derived from the actual footprint (double-buffered I/O blocks +
    # scratch + headroom for compiler temporaries), instead of a blanket limit.
    io_bytes = 4 * (TB * Cin * S + TB * Cout * S + 3 * Lv
                    + 9 * Cout * Cin + 9 * Cout * Cout + 2 * Cout)
    scratch_bytes = 4 * Cmax * LP
    vmem_limit = int(min(100 * 1024 * 1024,
                         max(16 * 1024 * 1024,
                             2 * io_bytes + scratch_bytes + (8 << 20))))

    out_flat = pl.pallas_call(
        kernel,
        out_shape=jax.ShapeDtypeStruct((B, Cout, S), x_nchw.dtype),
        grid_spec=pltpu.PrefetchScalarGridSpec(
            num_scalar_prefetch=0,
            grid=(B // TB,),
            in_specs=[
                pl.BlockSpec((TB, Cin, S), lambda b: (b, 0, 0)),
                pl.BlockSpec((3, Lv), lambda b: (0, 0)),
                pl.BlockSpec((3, 3, Cout, Cin), lambda b: (0, 0, 0, 0)),
                pl.BlockSpec((Cout, 1), lambda b: (0, 0)),
                pl.BlockSpec((3, 3, Cout, Cout), lambda b: (0, 0, 0, 0)),
                pl.BlockSpec((Cout, 1), lambda b: (0, 0)),
            ],
            out_specs=pl.BlockSpec((TB, Cout, S), lambda b: (b, 0, 0)),
            scratch_shapes=[pltpu.VMEM((Cmax, LP), jnp.float32)],
        ),
        compiler_params=pltpu.CompilerParams(
            dimension_semantics=("parallel",),     # batch-fold steps are independent
            vmem_limit_bytes=vmem_limit,
        ),
    )(x_flat, masks, w1k, b1k, w2k, b2k)

    return out_flat.reshape(B, Cout, H, W)


def _reference_conv_block(x_nchw, w1, b1, w2, b2):
    """Pure-JAX reference (lax conv, NCHW/OIHW) mirroring the PyTorch module."""
    Cin = x_nchw.shape[1]
    Cout = w1.shape[0]
    scale1 = (2.0 / (Cin * 9)) ** 0.5
    scale2 = (2.0 / (Cout * 9)) ** 0.5
    x = x_nchw.astype(jnp.float32)

    def wsconv(v, w, b, scale):
        y = jax.lax.conv_general_dilated(
            v * scale, w.astype(jnp.float32), window_strides=(1, 1),
            padding=((1, 1), (1, 1)),
            dimension_numbers=("NCHW", "OIHW", "NCHW"))
        return y + b[None, :, None, None]

    def leaky(v):
        return jnp.where(v > 0, v, 0.2 * v)

    def pixelnorm(v):
        return v / jnp.sqrt(jnp.mean(v * v, axis=1, keepdims=True) + 1e-8)

    y = pixelnorm(leaky(wsconv(x, w1, b1, scale1)))
    y = pixelnorm(leaky(wsconv(y, w2, b2, scale2)))
    return y


if __name__ == "__main__":
    key = jax.random.PRNGKey(0)
    Cin, Cout, H, W = 4, 8, 16, 16

    k_x, k_w1, k_w2, k_b1, k_b2 = jax.random.split(key, 5)
    # Weights in PyTorch OIHW layout (nn.init.normal_ on conv weights). Biases are
    # zero-initialized by the module; use small nonzero values here so the bias-add
    # path is actually exercised.
    w1 = jax.random.normal(k_w1, (Cout, Cin, 3, 3), dtype=jnp.float32)
    w2 = jax.random.normal(k_w2, (Cout, Cout, 3, 3), dtype=jnp.float32)
    b1 = 0.1 * jax.random.normal(k_b1, (Cout,), dtype=jnp.float32)
    b2 = 0.1 * jax.random.normal(k_b2, (Cout,), dtype=jnp.float32)

    # Primary case: B=4 exercises the batch-folded path (TB=2, 2 parallel grid steps).
    B = 4
    x = jax.random.normal(k_x, (B, Cin, H, W), dtype=jnp.float32)
    out = jax.block_until_ready(conv_block_forward(x, w1, b1, w2, b2))
    ref = _reference_conv_block(x, w1, b1, w2, b2)
    assert out.shape == (B, Cout, H, W)
    assert jnp.allclose(out, ref, rtol=1e-4, atol=1e-4), "mismatch vs JAX reference (B=4)"

    # Secondary case: B=2 exercises the TB=1 path (one image per grid step).
    x2 = x[:2]
    out2 = jax.block_until_ready(conv_block_forward(x2, w1, b1, w2, b2))
    ref2 = _reference_conv_block(x2, w1, b1, w2, b2)
    assert jnp.allclose(out2, ref2, rtol=1e-4, atol=1e-4), "mismatch vs JAX reference (B=2)"

    print("KERNEL_OK")
</pallas_src>

<mosaic_0001>
module attributes {stable_mosaic.version = 11 : i64} {
  func.func @kernel(%arg0: i32, %arg1: memref<2x4x256xf32, #tpu.memory_space<vmem>>, %arg2: memref<3x640xf32, #tpu.memory_space<vmem>>, %arg3: memref<3x3x8x4xf32, #tpu.memory_space<vmem>>, %arg4: memref<8x1xf32, #tpu.memory_space<vmem>>, %arg5: memref<3x3x8x8xf32, #tpu.memory_space<vmem>>, %arg6: memref<8x1xf32, #tpu.memory_space<vmem>>, %arg7: memref<2x8x256xf32, #tpu.memory_space<vmem>>, %arg8: memref<8x896xf32, #tpu.memory_space<vmem>>) attributes {dimension_semantics = [#tpu.dimension_semantics<parallel>], iteration_bounds = array<i64: 2>, scalar_prefetch = 0 : i64, scratch_operands = 1 : i64, tpu.core_type = #tpu.core_type<tc>, window_params = [{transform_indices = @transform_0, window_bounds = array<i64: 2, 4, 256>}, {pipeline_mode = #tpu.pipeline_mode<synchronous>, transform_indices = @transform_1, window_bounds = array<i64: 3, 640>}, {pipeline_mode = #tpu.pipeline_mode<synchronous>, transform_indices = @transform_2, window_bounds = array<i64: 3, 3, 8, 4>}, {pipeline_mode = #tpu.pipeline_mode<synchronous>, transform_indices = @transform_3, window_bounds = array<i64: 8, 1>}, {pipeline_mode = #tpu.pipeline_mode<synchronous>, transform_indices = @transform_4, window_bounds = array<i64: 3, 3, 8, 8>}, {pipeline_mode = #tpu.pipeline_mode<synchronous>, transform_indices = @transform_5, window_bounds = array<i64: 8, 1>}, {transform_indices = @transform_6, window_bounds = array<i64: 2, 8, 256>}]} {
    %c0 = arith.constant 0 : index
    %c0_0 = arith.constant 0 : index
    %0 = vector.load %arg2[%c0, %c0_0] : memref<3x640xf32, #tpu.memory_space<vmem>>, vector<1x640xf32>
    %c1 = arith.constant 1 : index
    %c0_1 = arith.constant 0 : index
    %1 = vector.load %arg2[%c1, %c0_1] : memref<3x640xf32, #tpu.memory_space<vmem>>, vector<1x640xf32>
    %c2 = arith.constant 2 : index
    %c0_2 = arith.constant 0 : index
    %2 = vector.load %arg2[%c2, %c0_2] : memref<3x640xf32, #tpu.memory_space<vmem>>, vector<1x640xf32>
    %cst = arith.constant 1.250000e-01 : f32
    %3 = vector.broadcast %cst : f32 to vector<1x8xf32>
    %cst_3 = arith.constant 0.000000e+00 : f32
    %4 = vector.broadcast %cst_3 : f32 to vector<8x128xf32>
    %c0_4 = arith.constant 0 : index
    %c0_5 = arith.constant 0 : index
    %5 = vector.load %arg8[%c0_4, %c0_5] : memref<8x896xf32, #tpu.memory_space<vmem>>, vector<8x128xf32>
    tpu.vector_store %arg8[%c0_4, %c0_5], %4 {strides = array<i32>} : memref<8x896xf32, #tpu.memory_space<vmem>>, vector<8x128xf32>,
    %cst_6 = arith.constant 0.000000e+00 : f32
    %6 = vector.broadcast %cst_6 : f32 to vector<8x128xf32>
    %c0_7 = arith.constant 0 : index
    %c384 = arith.constant 384 : index
    %7 = vector.load %arg8[%c0_7, %c384] : memref<8x896xf32, #tpu.memory_space<vmem>>, vector<8x128xf32>
    tpu.vector_store %arg8[%c0_7, %c384], %6 {strides = array<i32>} : memref<8x896xf32, #tpu.memory_space<vmem>>, vector<8x128xf32>,
    %cst_8 = arith.constant 0.000000e+00 : f32
    %8 = vector.broadcast %cst_8 : f32 to vector<8x128xf32>
    %c0_9 = arith.constant 0 : index
    %c768 = arith.constant 768 : index
    %9 = vector.load %arg8[%c0_9, %c768] : memref<8x896xf32, #tpu.memory_space<vmem>>, vector<8x128xf32>
    tpu.vector_store %arg8[%c0_9, %c768], %8 {strides = array<i32>} : memref<8x896xf32, #tpu.memory_space<vmem>>, vector<8x128xf32>,
    %c0_10 = arith.constant 0 : index
    %c0_11 = arith.constant 0 : index
    %c0_12 = arith.constant 0 : index
    %10 = vector.load %arg1[%c0_10, %c0_11, %c0_12] : memref<2x4x256xf32, #tpu.memory_space<vmem>>, vector<1x4x256xf32>
    %11 = vector.shape_cast %10 : vector<1x4x256xf32> to vector<4x256xf32>
    %c0_13 = arith.constant 0 : index
    %c128 = arith.constant 128 : index
    %12 = vector.load %arg8[%c0_13, %c128] : memref<8x896xf32, #tpu.memory_space<vmem>>, vector<4x256xf32>
    tpu.vector_store %arg8[%c0_13, %c128], %11 {strides = array<i32>} : memref<8x896xf32, #tpu.memory_space<vmem>>, vector<4x256xf32>,
    %c1_14 = arith.constant 1 : index
    %c0_15 = arith.constant 0 : index
    %c0_16 = arith.constant 0 : index
    %13 = vector.load %arg1[%c1_14, %c0_15, %c0_16] : memref<2x4x256xf32, #tpu.memory_space<vmem>>, vector<1x4x256xf32>
    %14 = vector.shape_cast %13 : vector<1x4x256xf32> to vector<4x256xf32>
    %c0_17 = arith.constant 0 : index
    %c512 = arith.constant 512 : index
    %15 = vector.load %arg8[%c0_17, %c512] : memref<8x896xf32, #tpu.memory_space<vmem>>, vector<4x256xf32>
    tpu.vector_store %arg8[%c0_17, %c512], %14 {strides = array<i32>} : memref<8x896xf32, #tpu.memory_space<vmem>>, vector<4x256xf32>,
    %c0_18 = arith.constant 0 : index
    %c111 = arith.constant 111 : index
    %16 = vector.load %arg8[%c0_18, %c111] : memref<8x896xf32, #tpu.memory_space<vmem>>, vector<4x640xf32>
    %c0_19 = arith.constant 0 : index
    %c0_20 = arith.constant 0 : index
    %c0_21 = arith.constant 0 : index
    %c0_22 = arith.constant 0 : index
    %17 = vector.load %arg3[%c0_19, %c0_20, %c0_21, %c0_22] : memref<3x3x8x4xf32, #tpu.memory_space<vmem>>, vector<1x1x8x4xf32>
    %18 = vector.shape_cast %17 : vector<1x1x8x4xf32> to vector<8x4xf32>
    %cst_23 = arith.constant dense<0.000000e+00> : vector<8x640xf32>
    %19 = tpu.matmul %18, %16, %cst_23 {dimension_numbers = #tpu.dot_dimension_numbers<[1], [0], [0], [1], [0, 0, 1, 1], [], []>} : vector<8x4xf32>, vector<4x640xf32>, vector<8x640xf32> -> vector<8x640xf32>
    %c0_24 = arith.constant 0 : index
    %c127 = arith.constant 127 : index
    %20 = vector.load %arg8[%c0_24, %c127] : memref<8x896xf32, #tpu.memory_space<vmem>>, vector<4x640xf32>
    %c1_25 = arith.constant 1 : index
    %c0_26 = arith.constant 0 : index
    %c0_27 = arith.constant 0 : index
    %c0_28 = arith.constant 0 : index
    %21 = vector.load %arg3[%c1_25, %c0_26, %c0_27, %c0_28] : memref<3x3x8x4xf32, #tpu.memory_space<vmem>>, vector<1x1x8x4xf32>
    %22 = vector.shape_cast %21 : vector<1x1x8x4xf32> to vector<8x4xf32>
    %cst_29 = arith.constant dense<0.000000e+00> : vector<8x640xf32>
    %23 = tpu.matmul %22, %20, %cst_29 {dimension_numbers = #tpu.dot_dimension_numbers<[1], [0], [0], [1], [0, 0, 1, 1], [], []>} : vector<8x4xf32>, vector<4x640xf32>, vector<8x640xf32> -> vector<8x640xf32>
    %24 = arith.addf %19, %23 : vector<8x640xf32>
    %c0_30 = arith.constant 0 : index
    %c143 = arith.constant 143 : index
    %25 = vector.load %arg8[%c0_30, %c143] : memref<8x896xf32, #tpu.memory_space<vmem>>, vector<4x640xf32>
    %c2_31 = arith.constant 2 : index
    %c0_32 = arith.constant 0 : index
    %c0_33 = arith.constant 0 : index
    %c0_34 = arith.constant 0 : index
    %26 = vector.load %arg3[%c2_31, %c0_32, %c0_33, %c0_34] : memref<3x3x8x4xf32, #tpu.memory_space<vmem>>, vector<1x1x8x4xf32>
    %27 = vector.shape_cast %26 : vector<1x1x8x4xf32> to vector<8x4xf32>
    %cst_35 = arith.constant dense<0.000000e+00> : vector<8x640xf32>
    %28 = tpu.matmul %27, %25, %cst_35 {dimension_numbers = #tpu.dot_dimension_numbers<[1], [0], [0], [1], [0, 0, 1, 1], [], []>} : vector<8x4xf32>, vector<4x640xf32>, vector<8x640xf32> -> vector<8x640xf32>
    %29 = arith.addf %24, %28 : vector<8x640xf32>
    %30 = vector.broadcast %0 : vector<1x640xf32> to vector<8x640xf32>
    %31 = arith.mulf %29, %30 : vector<8x640xf32>
    %c0_36 = arith.constant 0 : index
    %c112 = arith.constant 112 : index
    %32 = vector.load %arg8[%c0_36, %c112] : memref<8x896xf32, #tpu.memory_space<vmem>>, vector<4x640xf32>
    %c0_37 = arith.constant 0 : index
    %c1_38 = arith.constant 1 : index
    %c0_39 = arith.constant 0 : index
    %c0_40 = arith.constant 0 : index
    %33 = vector.load %arg3[%c0_37, %c1_38, %c0_39, %c0_40] : memref<3x3x8x4xf32, #tpu.memory_space<vmem>>, vector<1x1x8x4xf32>
    %34 = vector.shape_cast %33 : vector<1x1x8x4xf32> to vector<8x4xf32>
    %cst_41 = arith.constant dense<0.000000e+00> : vector<8x640xf32>
    %35 = tpu.matmul %34, %32, %cst_41 {dimension_numbers = #tpu.dot_dimension_numbers<[1], [0], [0], [1], [0, 0, 1, 1], [], []>} : vector<8x4xf32>, vector<4x640xf32>, vector<8x640xf32> -> vector<8x640xf32>
    %c0_42 = arith.constant 0 : index
    %c128_43 = arith.constant 128 : index
    %36 = vector.load %arg8[%c0_42, %c128_43] : memref<8x896xf32, #tpu.memory_space<vmem>>, vector<4x640xf32>
    %c1_44 = arith.constant 1 : index
    %c1_45 = arith.constant 1 : index
    %c0_46 = arith.constant 0 : index
    %c0_47 = arith.constant 0 : index
    %37 = vector.load %arg3[%c1_44, %c1_45, %c0_46, %c0_47] : memref<3x3x8x4xf32, #tpu.memory_space<vmem>>, vector<1x1x8x4xf32>
    %38 = vector.shape_cast %37 : vector<1x1x8x4xf32> to vector<8x4xf32>
    %cst_48 = arith.constant dense<0.000000e+00> : vector<8x640xf32>
    %39 = tpu.matmul %38, %36, %cst_48 {dimension_numbers = #tpu.dot_dimension_numbers<[1], [0], [0], [1], [0, 0, 1, 1], [], []>} : vector<8x4xf32>, vector<4x640xf32>, vector<8x640xf32> -> vector<8x640xf32>
    %40 = arith.addf %35, %39 : vector<8x640xf32>
    %c0_49 = arith.constant 0 : index
    %c144 = arith.constant 144 : index
    %41 = vector.load %arg8[%c0_49, %c144] : memref<8x896xf32, #tpu.memory_space<vmem>>, vector<4x640xf32>
    %c2_50 = arith.constant 2 : index
    %c1_51 = arith.constant 1 : index
    %c0_52 = arith.constant 0 : index
    %c0_53 = arith.constant 0 : index
    %42 = vector.load %arg3[%c2_50, %c1_51, %c0_52, %c0_53] : memref<3x3x8x4xf32, #tpu.memory_space<vmem>>, vector<1x1x8x4xf32>
    %43 = vector.shape_cast %42 : vector<1x1x8x4xf32> to vector<8x4xf32>
    %cst_54 = arith.constant dense<0.000000e+00> : vector<8x640xf32>
    %44 = tpu.matmul %43, %41, %cst_54 {dimension_numbers = #tpu.dot_dimension_numbers<[1], [0], [0], [1], [0, 0, 1, 1], [], []>} : vector<8x4xf32>, vector<4x640xf32>, vector<8x640xf32> -> vector<8x640xf32>
    %45 = arith.addf %40, %44 : vector<8x640xf32>
    %46 = arith.addf %31, %45 : vector<8x640xf32>
    %c0_55 = arith.constant 0 : index
    %c113 = arith.constant 113 : index
    %47 = vector.load %arg8[%c0_55, %c113] : memref<8x896xf32, #tpu.memory_space<vmem>>, vector<4x640xf32>
    %c0_56 = arith.constant 0 : index
    %c2_57 = arith.constant 2 : index
    %c0_58 = arith.constant 0 : index
    %c0_59 = arith.constant 0 : index
    %48 = vector.load %arg3[%c0_56, %c2_57, %c0_58, %c0_59] : memref<3x3x8x4xf32, #tpu.memory_space<vmem>>, vector<1x1x8x4xf32>
    %49 = vector.shape_cast %48 : vector<1x1x8x4xf32> to vector<8x4xf32>
    %cst_60 = arith.constant dense<0.000000e+00> : vector<8x640xf32>
    %50 = tpu.matmul %49, %47, %cst_60 {dimension_numbers = #tpu.dot_dimension_numbers<[1], [0], [0], [1], [0, 0, 1, 1], [], []>} : vector<8x4xf32>, vector<4x640xf32>, vector<8x640xf32> -> vector<8x640xf32>
    %c0_61 = arith.constant 0 : index
    %c129 = arith.constant 129 : index
    %51 = vector.load %arg8[%c0_61, %c129] : memref<8x896xf32, #tpu.memory_space<vmem>>, vector<4x640xf32>
    %c1_62 = arith.constant 1 : index
    %c2_63 = arith.constant 2 : index
    %c0_64 = arith.constant 0 : index
    %c0_65 = arith.constant 0 : index
    %52 = vector.load %arg3[%c1_62, %c2_63, %c0_64, %c0_65] : memref<3x3x8x4xf32, #tpu.memory_space<vmem>>, vector<1x1x8x4xf32>
    %53 = vector.shape_cast %52 : vector<1x1x8x4xf32> to vector<8x4xf32>
    %cst_66 = arith.constant dense<0.000000e+00> : vector<8x640xf32>
    %54 = tpu.matmul %53, %51, %cst_66 {dimension_numbers = #tpu.dot_dimension_numbers<[1], [0], [0], [1], [0, 0, 1, 1], [], []>} : vector<8x4xf32>, vector<4x640xf32>, vector<8x640xf32> -> vector<8x640xf32>
    %55 = arith.addf %50, %54 : vector<8x640xf32>
    %c0_67 = arith.constant 0 : index
    %c145 = arith.constant 145 : index
    %56 = vector.load %arg8[%c0_67, %c145] : memref<8x896xf32, #tpu.memory_space<vmem>>, vector<4x640xf32>
    %c2_68 = arith.constant 2 : index
    %c2_69 = arith.constant 2 : index
    %c0_70 = arith.constant 0 : index
    %c0_71 = arith.constant 0 : index
    %57 = vector.load %arg3[%c2_68, %c2_69, %c0_70, %c0_71] : memref<3x3x8x4xf32, #tpu.memory_space<vmem>>, vector<1x1x8x4xf32>
    %58 = vector.shape_cast %57 : vector<1x1x8x4xf32> to vector<8x4xf32>
    %cst_72 = arith.constant dense<0.000000e+00> : vector<8x640xf32>
    %59 = tpu.matmul %58, %56, %cst_72 {dimension_numbers = #tpu.dot_dimension_numbers<[1], [0], [0], [1], [0, 0, 1, 1], [], []>} : vector<8x4xf32>, vector<4x640xf32>, vector<8x640xf32> -> vector<8x640xf32>
    %60 = arith.addf %55, %59 : vector<8x640xf32>
    %61 = vector.broadcast %1 : vector<1x640xf32> to vector<8x640xf32>
    %62 = arith.mulf %60, %61 : vector<8x640xf32>
    %63 = arith.addf %46, %62 : vector<8x640xf32>
    %c0_73 = arith.constant 0 : index
    %c0_74 = arith.constant 0 : index
    %64 = vector.load %arg4[%c0_73, %c0_74] : memref<8x1xf32, #tpu.memory_space<vmem>>, vector<8x1xf32>
    %65 = vector.broadcast %64 : vector<8x1xf32> to vector<8x640xf32>
    %66 = arith.addf %63, %65 : vector<8x640xf32>
    %cst_75 = arith.constant 2.000000e-01 : f32
    %67 = vector.broadcast %cst_75 : f32 to vector<8x640xf32>
    %68 = arith.mulf %67, %66 : vector<8x640xf32>
    %69 = arith.maximumf %66, %68 : vector<8x640xf32>
    %70 = arith.mulf %69, %69 : vector<8x640xf32>
    %cst_76 = arith.constant dense<0.000000e+00> : vector<1x640xf32>
    %71 = tpu.matmul %3, %70, %cst_76 {dimension_numbers = #tpu.dot_dimension_numbers<[1], [0], [0], [1], [0, 0, 1, 1], [], []>} : vector<1x8xf32>, vector<8x640xf32>, vector<1x640xf32> -> vector<1x640xf32>
    %cst_77 = arith.constant 9.99999993E-9 : f32
    %72 = vector.broadcast %cst_77 : f32 to vector<1x640xf32>
    %73 = arith.addf %71, %72 : vector<1x640xf32>
    %74 = math.rsqrt %73 : vector<1x640xf32>
    %75 = vector.broadcast %74 : vector<1x640xf32> to vector<8x640xf32>
    %76 = arith.mulf %69, %75 : vector<8x640xf32>
    %77 = vector.broadcast %2 : vector<1x640xf32> to vector<8x640xf32>
    %78 = arith.mulf %76, %77 : vector<8x640xf32>
    %c0_78 = arith.constant 0 : index
    %c128_79 = arith.constant 128 : index
    %79 = vector.load %arg8[%c0_78, %c128_79] : memref<8x896xf32, #tpu.memory_space<vmem>>, vector<8x640xf32>
    tpu.vector_store %arg8[%c0_78, %c128_79], %78 {strides = array<i32>} : memref<8x896xf32, #tpu.memory_space<vmem>>, vector<8x640xf32>,
    %c0_80 = arith.constant 0 : index
    %c111_81 = arith.constant 111 : index
    %80 = vector.load %arg8[%c0_80, %c111_81] : memref<8x896xf32, #tpu.memory_space<vmem>>, vector<8x640xf32>
    %c0_82 = arith.constant 0 : index
    %c0_83 = arith.constant 0 : index
    %c0_84 = arith.constant 0 : index
    %c0_85 = arith.constant 0 : index
    %81 = vector.load %arg5[%c0_82, %c0_83, %c0_84, %c0_85] : memref<3x3x8x8xf32, #tpu.memory_space<vmem>>, vector<1x1x8x8xf32>
    %82 = vector.shape_cast %81 : vector<1x1x8x8xf32> to vector<8x8xf32>
    %cst_86 = arith.constant dense<0.000000e+00> : vector<8x640xf32>
    %83 = tpu.matmul %82, %80, %cst_86 {dimension_numbers = #tpu.dot_dimension_numbers<[1], [0], [0], [1], [0, 0, 1, 1], [], []>} : vector<8x8xf32>, vector<8x640xf32>, vector<8x640xf32> -> vector<8x640xf32>
    %c0_87 = arith.constant 0 : index
    %c127_88 = arith.constant 127 : index
    %84 = vector.load %arg8[%c0_87, %c127_88] : memref<8x896xf32, #tpu.memory_space<vmem>>, vector<8x640xf32>
    %c1_89 = arith.constant 1 : index
    %c0_90 = arith.constant 0 : index
    %c0_91 = arith.constant 0 : index
    %c0_92 = arith.constant 0 : index
    %85 = vector.load %arg5[%c1_89, %c0_90, %c0_91, %c0_92] : memref<3x3x8x8xf32, #tpu.memory_space<vmem>>, vector<1x1x8x8xf32>
    %86 = vector.shape_cast %85 : vector<1x1x8x8xf32> to vector<8x8xf32>
    %cst_93 = arith.constant dense<0.000000e+00> : vector<8x640xf32>
    %87 = tpu.matmul %86, %84, %cst_93 {dimension_numbers = #tpu.dot_dimension_numbers<[1], [0], [0], [1], [0, 0, 1, 1], [], []>} : vector<8x8xf32>, vector<8x640xf32>, vector<8x640xf32> -> vector<8x640xf32>
    %88 = arith.addf %83, %87 : vector<8x640xf32>
    %c0_94 = arith.constant 0 : index
    %c143_95 = arith.constant 143 : index
    %89 = vector.load %arg8[%c0_94, %c143_95] : memref<8x896xf32, #tpu.memory_space<vmem>>, vector<8x640xf32>
    %c2_96 = arith.constant 2 : index
    %c0_97 = arith.constant 0 : index
    %c0_98 = arith.constant 0 : index
    %c0_99 = arith.constant 0 : index
    %90 = vector.load %arg5[%c2_96, %c0_97, %c0_98, %c0_99] : memref<3x3x8x8xf32, #tpu.memory_space<vmem>>, vector<1x1x8x8xf32>
    %91 = vector.shape_cast %90 : vector<1x1x8x8xf32> to vector<8x8xf32>
    %cst_100 = arith.constant dense<0.000000e+00> : vector<8x640xf32>
    %92 = tpu.matmul %91, %89, %cst_100 {dimension_numbers = #tpu.dot_dimension_numbers<[1], [0], [0], [1], [0, 0, 1, 1], [], []>} : vector<8x8xf32>, vector<8x640xf32>, vector<8x640xf32> -> vector<8x640xf32>
    %93 = arith.addf %88, %92 : vector<8x640xf32>
    %94 = vector.broadcast %0 : vector<1x640xf32> to vector<8x640xf32>
    %95 = arith.mulf %93, %94 : vector<8x640xf32>
    %c0_101 = arith.constant 0 : index
    %c112_102 = arith.constant 112 : index
    %96 = vector.load %arg8[%c0_101, %c112_102] : memref<8x896xf32, #tpu.memory_space<vmem>>, vector<8x640xf32>
    %c0_103 = arith.constant 0 : index
    %c1_104 = arith.constant 1 : index
    %c0_105 = arith.constant 0 : index
    %c0_106 = arith.constant 0 : index
    %97 = vector.load %arg5[%c0_103, %c1_104, %c0_105, %c0_106] : memref<3x3x8x8xf32, #tpu.memory_space<vmem>>, vector<1x1x8x8xf32>
    %98 = vector.shape_cast %97 : vector<1x1x8x8xf32> to vector<8x8xf32>
    %cst_107 = arith.constant dense<0.000000e+00> : vector<8x640xf32>
    %99 = tpu.matmul %98, %96, %cst_107 {dimension_numbers = #tpu.dot_dimension_numbers<[1], [0], [0], [1], [0, 0, 1, 1], [], []>} : vector<8x8xf32>, vector<8x640xf32>, vector<8x640xf32> -> vector<8x640xf32>
    %c0_108 = arith.constant 0 : index
    %c128_109 = arith.constant 128 : index
    %100 = vector.load %arg8[%c0_108, %c128_109] : memref<8x896xf32, #tpu.memory_space<vmem>>, vector<8x640xf32>
    %c1_110 = arith.constant 1 : index
    %c1_111 = arith.constant 1 : index
    %c0_112 = arith.constant 0 : index
    %c0_113 = arith.constant 0 : index
    %101 = vector.load %arg5[%c1_110, %c1_111, %c0_112, %c0_113] : memref<3x3x8x8xf32, #tpu.memory_space<vmem>>, vector<1x1x8x8xf32>
    %102 = vector.shape_cast %101 : vector<1x1x8x8xf32> to vector<8x8xf32>
    %cst_114 = arith.constant dense<0.000000e+00> : vector<8x640xf32>
    %103 = tpu.matmul %102, %100, %cst_114 {dimension_numbers = #tpu.dot_dimension_numbers<[1], [0], [0], [1], [0, 0, 1, 1], [], []>} : vector<8x8xf32>, vector<8x640xf32>, vector<8x640xf32> -> vector<8x640xf32>
    %104 = arith.addf %99, %103 : vector<8x640xf32>
    %c0_115 = arith.constant 0 : index
    %c144_116 = arith.constant 144 : index
    %105 = vector.load %arg8[%c0_115, %c144_116] : memref<8x896xf32, #tpu.memory_space<vmem>>, vector<8x640xf32>
    %c2_117 = arith.constant 2 : index
    %c1_118 = arith.constant 1 : index
    %c0_119 = arith.constant 0 : index
    %c0_120 = arith.constant 0 : index
    %106 = vector.load %arg5[%c2_117, %c1_118, %c0_119, %c0_120] : memref<3x3x8x8xf32, #tpu.memory_space<vmem>>, vector<1x1x8x8xf32>
    %107 = vector.shape_cast %106 : vector<1x1x8x8xf32> to vector<8x8xf32>
    %cst_121 = arith.constant dense<0.000000e+00> : vector<8x640xf32>
    %108 = tpu.matmul %107, %105, %cst_121 {dimension_numbers = #tpu.dot_dimension_numbers<[1], [0], [0], [1], [0, 0, 1, 1], [], []>} : vector<8x8xf32>, vector<8x640xf32>, vector<8x640xf32> -> vector<8x640xf32>
    %109 = arith.addf %104, %108 : vector<8x640xf32>
    %110 = arith.addf %95, %109 : vector<8x640xf32>
    %c0_122 = arith.constant 0 : index
    %c113_123 = arith.constant 113 : index
    %111 = vector.load %arg8[%c0_122, %c113_123] : memref<8x896xf32, #tpu.memory_space<vmem>>, vector<8x640xf32>
    %c0_124 = arith.constant 0 : index
    %c2_125 = arith.constant 2 : index
    %c0_126 = arith.constant 0 : index
    %c0_127 = arith.constant 0 : index
    %112 = vector.load %arg5[%c0_124, %c2_125, %c0_126, %c0_127] : memref<3x3x8x8xf32, #tpu.memory_space<vmem>>, vector<1x1x8x8xf32>
    %113 = vector.shape_cast %112 : vector<1x1x8x8xf32> to vector<8x8xf32>
    %cst_128 = arith.constant dense<0.000000e+00> : vector<8x640xf32>
    %114 = tpu.matmul %113, %111, %cst_128 {dimension_numbers = #tpu.dot_dimension_numbers<[1], [0], [0], [1], [0, 0, 1, 1], [], []>} : vector<8x8xf32>, vector<8x640xf32>, vector<8x640xf32> -> vector<8x640xf32>
    %c0_129 = arith.constant 0 : index
    %c129_130 = arith.constant 129 : index
    %115 = vector.load %arg8[%c0_129, %c129_130] : memref<8x896xf32, #tpu.memory_space<vmem>>, vector<8x640xf32>
    %c1_131 = arith.constant 1 : index
    %c2_132 = arith.constant 2 : index
    %c0_133 = arith.constant 0 : index
    %c0_134 = arith.constant 0 : index
    %116 = vector.load %arg5[%c1_131, %c2_132, %c0_133, %c0_134] : memref<3x3x8x8xf32, #tpu.memory_space<vmem>>, vector<1x1x8x8xf32>
    %117 = vector.shape_cast %116 : vector<1x1x8x8xf32> to vector<8x8xf32>
    %cst_135 = arith.constant dense<0.000000e+00> : vector<8x640xf32>
    %118 = tpu.matmul %117, %115, %cst_135 {dimension_numbers = #tpu.dot_dimension_numbers<[1], [0], [0], [1], [0, 0, 1, 1], [], []>} : vector<8x8xf32>, vector<8x640xf32>, vector<8x640xf32> -> vector<8x640xf32>
    %119 = arith.addf %114, %118 : vector<8x640xf32>
    %c0_136 = arith.constant 0 : index
    %c145_137 = arith.constant 145 : index
    %120 = vector.load %arg8[%c0_136, %c145_137] : memref<8x896xf32, #tpu.memory_space<vmem>>, vector<8x640xf32>
    %c2_138 = arith.constant 2 : index
    %c2_139 = arith.constant 2 : index
    %c0_140 = arith.constant 0 : index
    %c0_141 = arith.constant 0 : index
    %121 = vector.load %arg5[%c2_138, %c2_139, %c0_140, %c0_141] : memref<3x3x8x8xf32, #tpu.memory_space<vmem>>, vector<1x1x8x8xf32>
    %122 = vector.shape_cast %121 : vector<1x1x8x8xf32> to vector<8x8xf32>
    %cst_142 = arith.constant dense<0.000000e+00> : vector<8x640xf32>
    %123 = tpu.matmul %122, %120, %cst_142 {dimension_numbers = #tpu.dot_dimension_numbers<[1], [0], [0], [1], [0, 0, 1, 1], [], []>} : vector<8x8xf32>, vector<8x640xf32>, vector<8x640xf32> -> vector<8x640xf32>
    %124 = arith.addf %119, %123 : vector<8x640xf32>
    %125 = vector.broadcast %1 : vector<1x640xf32> to vector<8x640xf32>
    %126 = arith.mulf %124, %125 : vector<8x640xf32>
    %127 = arith.addf %110, %126 : vector<8x640xf32>
    %c0_143 = arith.constant 0 : index
    %c0_144 = arith.constant 0 : index
    %128 = vector.load %arg6[%c0_143, %c0_144] : memref<8x1xf32, #tpu.memory_space<vmem>>, vector<8x1xf32>
    %129 = vector.broadcast %128 : vector<8x1xf32> to vector<8x640xf32>
    %130 = arith.addf %127, %129 : vector<8x640xf32>
    %cst_145 = arith.constant 2.000000e-01 : f32
    %131 = vector.broadcast %cst_145 : f32 to vector<8x640xf32>
    %132 = arith.mulf %131, %130 : vector<8x640xf32>
    %133 = arith.maximumf %130, %132 : vector<8x640xf32>
    %134 = arith.mulf %133, %133 : vector<8x640xf32>
    %cst_146 = arith.constant dense<0.000000e+00> : vector<1x640xf32>
    %135 = tpu.matmul %3, %134, %cst_146 {dimension_numbers = #tpu.dot_dimension_numbers<[1], [0], [0], [1], [0, 0, 1, 1], [], []>} : vector<1x8xf32>, vector<8x640xf32>, vector<1x640xf32> -> vector<1x640xf32>
    %cst_147 = arith.constant 9.99999993E-9 : f32
    %136 = vector.broadcast %cst_147 : f32 to vector<1x640xf32>
    %137 = arith.addf %135, %136 : vector<1x640xf32>
    %138 = math.rsqrt %137 : vector<1x640xf32>
    %139 = vector.broadcast %138 : vector<1x640xf32> to vector<8x640xf32>
    %140 = arith.mulf %133, %139 : vector<8x640xf32>
    %141 = vector.extract_strided_slice %140 {offsets = [0, 0], sizes = [8, 256], strides = [1, 1]} : vector<8x640xf32> to vector<8x256xf32>
    %c0_148 = arith.constant 0 : index
    %c0_149 = arith.constant 0 : index
    %c0_150 = arith.constant 0 : index
    %142 = vector.load %arg7[%c0_148, %c0_149, %c0_150] : memref<2x8x256xf32, #tpu.memory_space<vmem>>, vector<1x8x256xf32>
    %143 = vector.shape_cast %142 : vector<1x8x256xf32> to vector<8x256xf32>
    %144 = vector.shape_cast %141 : vector<8x256xf32> to vector<1x8x256xf32>
    tpu.vector_store %arg7[%c0_148, %c0_149, %c0_150], %144 {strides = array<i32>} : memref<2x8x256xf32, #tpu.memory_space<vmem>>, vector<1x8x256xf32>,
    %145 = vector.extract_strided_slice %140 {offsets = [0, 384], sizes = [8, 256], strides = [1, 1]} : vector<8x640xf32> to vector<8x256xf32>
    %c1_151 = arith.constant 1 : index
    %c0_152 = arith.constant 0 : index
    %c0_153 = arith.constant 0 : index
    %146 = vector.load %arg7[%c1_151, %c0_152, %c0_153] : memref<2x8x256xf32, #tpu.memory_space<vmem>>, vector<1x8x256xf32>
    %147 = vector.shape_cast %146 : vector<1x8x256xf32> to vector<8x256xf32>
    %148 = vector.shape_cast %145 : vector<8x256xf32> to vector<1x8x256xf32>
    tpu.vector_store %arg7[%c1_151, %c0_152, %c0_153], %148 {strides = array<i32>} : memref<2x8x256xf32, #tpu.memory_space<vmem>>, vector<1x8x256xf32>,
    return
  }
  func.func @transform_0(%arg0: i32) -> (i32, i32, i32) {
    %c0_i32 = arith.constant 0 : i32
    %c0_i32_0 = arith.constant 0 : i32
    %c0_i32_1 = arith.constant 0 : i32
    return %arg0, %c0_i32, %c0_i32_0 : i32, i32, i32
  }
  func.func @transform_1(%arg0: i32) -> (i32, i32) {
    %c0_i32 = arith.constant 0 : i32
    %c0_i32_0 = arith.constant 0 : i32
    %c0_i32_1 = arith.constant 0 : i32
    return %c0_i32, %c0_i32_0 : i32, i32
  }
  func.func @transform_2(%arg0: i32) -> (i32, i32, i32, i32) {
    %c0_i32 = arith.constant 0 : i32
    %c0_i32_0 = arith.constant 0 : i32
    %c0_i32_1 = arith.constant 0 : i32
    %c0_i32_2 = arith.constant 0 : i32
    %c0_i32_3 = arith.constant 0 : i32
    return %c0_i32, %c0_i32_0, %c0_i32_1, %c0_i32_2 : i32, i32, i32, i32
  }
  func.func @transform_3(%arg0: i32) -> (i32, i32) {
    %c0_i32 = arith.constant 0 : i32
    %c0_i32_0 = arith.constant 0 : i32
    %c0_i32_1 = arith.constant 0 : i32
    return %c0_i32, %c0_i32_0 : i32, i32
  }
  func.func @transform_4(%arg0: i32) -> (i32, i32, i32, i32) {
    %c0_i32 = arith.constant 0 : i32
    %c0_i32_0 = arith.constant 0 : i32
    %c0_i32_1 = arith.constant 0 : i32
    %c0_i32_2 = arith.constant 0 : i32
    %c0_i32_3 = arith.constant 0 : i32
    return %c0_i32, %c0_i32_0, %c0_i32_1, %c0_i32_2 : i32, i32, i32, i32
  }
  func.func @transform_5(%arg0: i32) -> (i32, i32) {
    %c0_i32 = arith.constant 0 : i32
    %c0_i32_0 = arith.constant 0 : i32
    %c0_i32_1 = arith.constant 0 : i32
    return %c0_i32, %c0_i32_0 : i32, i32
  }
  func.func @transform_6(%arg0: i32) -> (i32, i32, i32) {
    %c0_i32 = arith.constant 0 : i32
    %c0_i32_0 = arith.constant 0 : i32
    %c0_i32_1 = arith.constant 0 : i32
    return %arg0, %c0_i32, %c0_i32_0 : i32, i32, i32
  }
}

</mosaic_0001>

<bundles_post_ra>
// kernel: conv_block_forward.1
= control target key start
LH: loop header
LB: loop body
LE: loop exit
PB: predicated region body
PF: predicated region fallthrough
CT: control target
= control target key end

     0   :  { %s5871_s21 = smov 0   ;;  %s6546_s0 = inlined_call_operand.vmem [shape: f32[4,4,256], index: 0, kind: input, shape index: {}]   ;;  %s6547_s1 = inlined_call_operand.vmem [shape: f32[3,640], index: 1, kind: input, shape index: {}]   ;;  %s6548_s2 = inlined_call_operand.vmem [shape: f32[3,3,8,4], index: 2, kind: input, shape index: {}]   ;;  %s6549_s3 = inlined_call_operand.vmem [shape: f32[8,1], index: 3, kind: input, shape index: {}]   ;;  %s6550_s4 = inlined_call_operand.vmem [shape: f32[3,3,8,8], index: 4, kind: input, shape index: {}]   ;;  %s6551_s5 = inlined_call_operand.vmem [shape: f32[8,1], index: 5, kind: input, shape index: {}]   ;;  %s6552_s6 = inlined_call_operand.vmem [shape: f32[4,8,256], index: 6, kind: output, shape index: {}]  }
   0x1 LB: > { %s5399_s22 = sadd.s32 4294967295, %s5822_s21   ;;  %p5403_p0 = scmp.ge.s32.totalorder %s5822_s21, 1  ;;  %s5822_s21 = sphi %s5871_s21, %s16_s21  }
   0x2   : > { %p214_p1 = scmp.lt.s32.totalorder %s5822_s21, 3 }
   0x4   : > { %p215_p2 = pnand %p5403_p0, %p214_p1 }
   0x5   : > { %v5824_v0 = vmov (!%p215_p2), 0.0   ;;  %s5404_s23 = sshll.u32 (!%p215_p2), %s5399_s22, 1  ;;  %s5825_s28 = smov (!%p215_p2), 1   ;;  %v5833_v19 = vmov (!%p215_p2), 0   ;;  %v2580_v20 = vld [vmem:[%s6549_s3] sm:$0xff] (!%p215_p2)  ;;  %vm318_vm0 = vcmask (!%p215_p2), 1043456  }
   0x6   : > { %218 = sbr.rel (%p215_p2) target bundleno = 1337 (0x539), region = 44  ;;  %265 = vst [vmem:[#allocation2] sm:$0xff] (!%p215_p2), %v5824_v0  ;;  %266 = vst [vmem:[#allocation2 + $0x18] sm:$0xff] (!%p215_p2), %v5824_v0  ;;  %393 = vmatprep.mubr.f32.mxu0 (!%p215_p2), %v5824_v0  ;;  %464 = vmatprep.mubr.f32.mxu1 (!%p215_p2), %v5824_v0  ;;  %p247_p3 = scmp.lt.s32.totalorder (!%p215_p2), %s5404_s23, 3  ;;  %vm308_vm1 = vcmask (!%p215_p2), 7168   ;;  %vm553_vm2 = vcmask (!%p215_p2), 138240  }
   0x7   : > { %267 = vst [vmem:[#allocation2 + $0x30] sm:$0xff] (!%p215_p2), %v5824_v0  ;;  %s5826_s29 = smov (!%p215_p2), 17   ;;  %s5827_s30 = smov (!%p215_p2), 113   ;;  %5794 = vset.pattern.permute.xlu0 (!%p215_p2), %v5833_v19  ;;  %v5413_v34 = vld [vmem:[%s6548_s2 + $0x18] sm:$0xff] (!%p215_p2)  ;;  %vm314_vm3 = vcmask (!%p215_p2), 31744   ;;  %vm5834_vm4 = vmmov (!%p215_p2), 0  }
   0x8   : > { %s5828_s7 = smov (!%p215_p2), 16   ;;  %s5829_s8 = smov (!%p215_p2), 112   ;;  %v287_v46 = vld [vmem:[%s6548_s2] sm:$0xff] (!%p215_p2)  ;;  %vm810_vm5 = vcmask (!%p215_p2), 924672   ;;  %v5430_v56 = vld [vmem:[%s6548_s2 + $0x30] sm:$0xff] (!%p215_p2)  ;;  %vm1318_vm6 = vcmask (!%p215_p2), 130048  }
   0x9   : > { %s5830_s9 = smov (!%p215_p2), 127   ;;  %s5831_s10 = smov (!%p215_p2), 15   ;;  %vm1563_vm7 = vcmask (!%p215_p2), 916480   ;;  %v6039_v63 = vld [vmem:[%s6548_s2 + $0x8] sm:$0xff] (!%p215_p2)  ;;  %vm1820_vm8 = vcmask (!%p215_p2), 1039360   ;;  %vm2063_vm9 = vcmask (!%p215_p2), 121856  }
   0xa   : > { %s5832_s11 = smov (!%p215_p2), 111   ;;  %vm2308_vm10 = vcmask (!%p215_p2), 908288   ;;  %vm2606_vm11 = vcmask (!%p215_p2), 64512  }
   0xd   : > { %s6554_s23 = smov (!%p247_p3, %s5404_s23), 3  ;;  %v281_v1 = vld [vmem:[#allocation2] sm:$0xf]  ;;  %v5890_v2 = vld [vmem:[#allocation2 + $0x18] sm:$0xf] }
   0xe   : > { %s5538_s24 = sshll.u32 %s6554_s23, 3  ;;  %v5764_v4 = vpack.i.bf16 %v5890_v2, %v281_v1  ;;  %v786_v12 = vld [vmem:[#allocation2 + $0x18] sm:$0xf]  ;;  %v789_v13 = vld [vmem:[#allocation2 + $0x30] sm:$0xf] }
   0xf   : > { %s251_s27 = scalar_lea.vmem %s6546_s0, %s5538_s24  ;;  %v5774_v14 = vpack.i.bf16 %v789_v13, %v786_v12  ;;  %s5539_s24 = sshll.u32 %s6554_s23, 4 }
  0x10   : > { %v268_v3 = vld [vmem:[%s251_s27] sm:$0xff]  ;;  %v5412_v5 = vld [vmem:[%s251_s27 + $0x8] sm:$0xff]  ;;  %5765 = vrot.lane.b32.xlu1 %v5764_v4, %s5825_s28  ;;  %s258_s27 = scalar_lea.vmem %s6552_s6, %s5539_s24 }
  0x11   : > { %272 = vst [vmem:[#allocation2 + $0x8] sm:$0xf] %v268_v3  ;;  %v270_v6 = vcombine.high %v268_v3, %v268_v3  ;;  %279 = vst [vmem:[#allocation2 + $0x20] sm:$0xf] %v5412_v5  ;;  %v277_v7 = vcombine.high %v5412_v5, %v5412_v5 }
  0x13   : > { %273 = vst [vmem:[#allocation2 + $0x10] sm:$0xf] %v270_v6  ;;  %280 = vst [vmem:[#allocation2 + $0x28] sm:$0xf] %v277_v7 }
  0x14   : > { %5770 = vrot.lane.b32.xlu1 %v5764_v4, %s5826_s29 }
  0x18   : > { %v5895_v8 = vld [vmem:[#allocation2 + $0x8] sm:$0xf]  ;;  %v5899_v9 = vld [vmem:[#allocation2 + $0x20] sm:$0xf] }
  0x19   : > { %298 = vrot.lane.b32.xlu0 %v5895_v8, %s5825_s28  ;;  %304 = vrot.lane.b32.xlu1 %v5899_v9, %s5825_s28  ;;  %v784_v17 = vld [vmem:[#allocation2 + $0x8] sm:$0xf]  ;;  %v787_v18 = vld [vmem:[#allocation2 + $0x20] sm:$0xf] }
  0x1a   : > { %v5905_v10 = vld [vmem:[#allocation2 + $0x10] sm:$0xf]  ;;  %v5909_v11 = vld [vmem:[#allocation2 + $0x28] sm:$0xf] }
  0x1b   : > { %v788_v15 = vld [vmem:[#allocation2 + $0x28] sm:$0xf]  ;;  %v785_v16 = vld [vmem:[#allocation2 + $0x10] sm:$0xf] }
  0x1d   : > { %549 = vrot.lane.b32.xlu0 %v5899_v9, %s5826_s29  ;;  %543 = vrot.lane.b32.xlu1 %v5895_v8, %s5826_s29 }
  0x21   : > { %300 = vrot.lane.b32.xlu0 %v5905_v10, %s5825_s28  ;;  %551 = vrot.lane.b32.xlu1 %v5909_v11, %s5826_s29 }
  0x25   : > { %306 = vrot.lane.b32.xlu0 %v5909_v11, %s5825_s28  ;;  %5775 = vrot.lane.b32.xlu1 %v5774_v14, %s5827_s30 }
  0x29   : > { %545 = vrot.lane.b32.xlu0 %v5905_v10, %s5826_s29  ;;  %806 = vrot.lane.b32.xlu1 %v788_v15, %s5827_s30 }
  0x2d   : > { %800 = vrot.lane.b32.xlu0 %v785_v16, %s5827_s30  ;;  %1316 = vrot.lane.b32.xlu1 %v5909_v11, %s5828_s7 }
  0x31   : > { %798 = vrot.lane.b32.xlu0 %v784_v17, %s5827_s30  ;;  %1561 = vrot.lane.b32.xlu1 %v789_v13, %s5829_s8 }
  0x35   : > { %1314 = vrot.lane.b32.xlu0 %v5899_v9, %s5828_s7  ;;  %1810 = vrot.lane.b32.xlu1 %v785_v16, %s5830_s9 }
  0x39   : > { %1559 = vrot.lane.b32.xlu0 %v788_v15, %s5829_s8  ;;  %1808 = vrot.lane.b32.xlu1 %v784_v17, %s5830_s9 }
  0x3d   : > { %804 = vrot.lane.b32.xlu0 %v787_v18, %s5827_s30  ;;  %1816 = vrot.lane.b32.xlu1 %v788_v15, %s5830_s9 }
  0x41   : > { %5780 = vrot.lane.b32.xlu0 %v5774_v14, %s5830_s9  ;;  %2055 = vrot.lane.b32.xlu1 %v5905_v10, %s5831_s10 }
  0x45   : > { %1814 = vrot.lane.b32.xlu0 %v787_v18, %s5830_s9  ;;  %1308 = vrot.lane.b32.xlu1 %v5895_v8, %s5828_s7 }
  0x49   : > { %2053 = vrot.lane.b32.xlu0 %v5895_v8, %s5831_s10  ;;  %2059 = vrot.lane.b32.xlu1 %v5899_v9, %s5831_s10 }
  0x4d   : > { %5785 = vrot.lane.b32.xlu0 %v5764_v4, %s5831_s10  ;;  %2061 = vrot.lane.b32.xlu1 %v5909_v11, %s5831_s10 }
  0x51   : > { %1310 = vrot.lane.b32.xlu0 %v5905_v10, %s5828_s7  ;;  %1555 = vrot.lane.b32.xlu1 %v786_v12, %s5829_s8 }
  0x55   : > { %5790 = vrot.lane.b32.xlu0 %v5764_v4, %s5828_s7  ;;  %2300 = vrot.lane.b32.xlu1 %v786_v12, %s5832_s11  ;;  %v6055_v12 = vld [vmem:[%s6548_s2 + $0x38] sm:$0xff] }
  0x59   : > { %1553 = vrot.lane.b32.xlu0 %v785_v16, %s5829_s8  ;;  %2296 = vrot.lane.b32.xlu1 %v784_v17, %s5832_s11 }
  0x5d   : > { %2298 = vrot.lane.b32.xlu0 %v785_v16, %s5832_s11  ;;  %2302 = vrot.lane.b32.xlu1 %v787_v18, %s5832_s11 }
  0x61   : > { %1551 = vrot.lane.b32.xlu0 %v784_v17, %s5829_s8  ;;  %2306 = vrot.lane.b32.xlu1 %v789_v13, %s5832_s11 }
  0x65   : > { %1557 = vrot.lane.b32.xlu0 %v787_v18, %s5829_s8  ;;  %3857 = vrot.lane.b32.xlu1 %v5824_v0, %s5828_s7 }
  0x69   : > { %2304 = vrot.lane.b32.xlu0 %v788_v15, %s5832_s11  ;;  %v5440_v15 = vld [vmem:[%s6548_s2 + $0x20] sm:$0xff] }
  0x6d   : > { %2583 = vperm.xlu0 %5794, %v2580_v20  }
  0x71   : > { %2903 = vrot.lane.b32.xlu0 %v5824_v0, %s5825_s28 }
  0x75   : > { %3140 = vrot.lane.b32.xlu0 %v5824_v0, %s5826_s29 }
  0x79   : > { %3401 = vrot.lane.b32.xlu0 %v5824_v0, %s5827_s30 }
  0x82   : > { %v5766_v21 = vpop.permute.xlu1 %5765 }
  0x83   : > { %v5768_v23 = vunpack.i.h.bf16 %v5766_v21  ;;  %v5767_v28 = vunpack.i.l.bf16 %v5766_v21 }
  0x86   : > { %v5771_v22 = vpop.permute.xlu1 %5770 }
  0x87   : > { %v5773_v29 = vunpack.i.h.bf16 %v5771_v22  ;;  %v5772_v40 = vunpack.i.l.bf16 %v5771_v22 }
  0x8b   : > { %v299_v24 = vpop.permute.xlu0 %298  ;;  %v305_v25 = vpop.permute.xlu1 %304 }
  0x8c   : > { %v312_v26 = vsel %vm308_vm1, %v5768_v23, %v305_v25  ;;  %v309_v37 = vsel %vm308_vm1, %v5767_v28, %v299_v24 }
  0x8d   : > { %5417 = vmatprep.subr.msk.mxu1 %vm318_vm0, %v312_v26 }
  0x8f   : > { %v550_v27 = vpop.permute.xlu0 %549  ;;  %v544_v30 = vpop.permute.xlu1 %543 }
  0x90   : > { %v557_v35 = vsel %vm553_vm2, %v5773_v29, %v550_v27  ;;  %v554_v47 = vsel %vm553_vm2, %v5772_v40, %v544_v30 }
  0x93   : > { %v301_v31 = vpop.permute.xlu0 %300  ;;  %v552_v36 = vpop.permute.xlu1 %551 }
  0x94   : > { %v310_v32 = vsel %vm308_vm1, %v299_v24, %v301_v31  ;;  %v311_v33 = vsel %vm308_vm1, %v301_v31, %v5768_v23  ;;  %v558_v49 = vsel %vm553_vm2, %v550_v27, %v552_v36 }
  0x95   : > { %5414 = vmatprep.subr.msk.mxu0 %vm318_vm0, %v310_v32  ;;  %5418 = vmatpush1.msk.msra.mxu1 %vm318_vm0, %v311_v33 }
  0x96   : > { %5415 = vmatpush1.msk.msra.mxu0 %vm318_vm0, %v309_v37  ;;  %5425 = vmatprep.subr.msk.mxu1 %vm318_vm0, %v557_v35 }
  0x97   : > { %5416 = vmatmul.mubr.msk.f32.vlgmr.msra.gmra.mrb[0].mxu0 %vm314_vm3, %v5413_v34  ;;  %v307_v38 = vpop.permute.xlu0 %306  ;;  %5580 = vmatprep.subr.mxu0 %v5824_v0  ;;  %v5776_v41 = vpop.permute.xlu1 %5775 }
  0x98   : > { %v313_v39 = vsel %vm308_vm1, %v305_v25, %v307_v38  ;;  %5582 = vmatprep.mubr.msk.f32.mxu0 %vm5834_vm4, %v5824_v0  ;;  %5419 = vmatmul.mubr.msk.f32.vlgmr.msra.gmra.mrb[0].mxu1 %vm314_vm3, %v5413_v34  ;;  %v5777_v43 = vunpack.i.l.bf16 %v5776_v41  ;;  %v5778_v53 = vunpack.i.h.bf16 %v5776_v41 }
  0x99   : > { %5581 = vmatpush3.msk.msra.mxu0 %vm318_vm0, %v313_v39  ;;  %707 = vmatprep.mubr.f32.mxu1 %v5824_v0 }
  0x9b   : > { %5583 = vmatmul.mubr.msk.f32.vlgmr.msra.gmra.mrb[2].mxu0 %vm314_vm3, %v5413_v34  ;;  %v546_v42 = vpop.permute.xlu0 %545  ;;  %v807_v48 = vpop.permute.xlu1 %806 }
  0x9c   : > { %v555_v44 = vsel %vm553_vm2, %v544_v30, %v546_v42  ;;  %v556_v45 = vsel %vm553_vm2, %v546_v42, %v5773_v29  ;;  %636 = vmatprep.mubr.f32.mxu0 %v5824_v0  ;;  %v815_v58 = vsel %vm810_vm5, %v807_v48, %v5778_v53  ;;  %v5466_v30 = vld [vmem:[%s6548_s2 + $0x10] sm:$0xff] }
  0x9d   : > { %5422 = vmatprep.subr.msk.mxu0 %vm318_vm0, %v555_v44  ;;  %5426 = vmatpush1.msk.msra.mxu1 %vm318_vm0, %v556_v45 }
  0x9e   : > { %5423 = vmatpush1.msk.msra.mxu0 %vm318_vm0, %v554_v47 }
  0x9f   : > { %5424 = vmatmul.mubr.msk.f32.vlgmr.msra.gmra.mrb[0].mxu0 %vm314_vm3, %v287_v46  ;;  %5585 = vmatprep.subr.mxu0 %v5824_v0  ;;  %v801_v50 = vpop.permute.xlu0 %800  ;;  %v1317_v52 = vpop.permute.xlu1 %1316 }
  0xa0   : > { %v812_v51 = vsel %vm810_vm5, %v801_v50, %v5777_v43  ;;  %5586 = vmatpush3.msk.msra.mxu0 %vm318_vm0, %v558_v49  ;;  %5587 = vmatprep.mubr.msk.f32.mxu0 %vm5834_vm4, %v5824_v0  ;;  %v5484_v49 = vld [vmem:[%s6548_s2 + $0x40] sm:$0xff] }
  0xa1   : > { %5431 = vmatprep.subr.msk.mxu0 %vm318_vm0, %v812_v51  ;;  %5427 = vmatmul.mubr.msk.f32.vlgmr.msra.gmra.mrb[0].mxu1 %vm314_vm3, %v287_v46 }
  0xa2   : > { %964 = vmatprep.mubr.f32.mxu1 %v5824_v0 }
  0xa3   : > { %5588 = vmatmul.mubr.msk.f32.vlgmr.msra.gmra.mrb[2].mxu0 %vm314_vm3, %v287_v46  ;;  %v799_v54 = vpop.permute.xlu0 %798  ;;  %v1562_v57 = vpop.permute.xlu1 %1561 }
  0xa4   : > { %v811_v55 = vsel %vm810_vm5, %v799_v54, %v801_v50  ;;  %893 = vmatprep.mubr.f32.mxu0 %v5824_v0 }
  0xa5   : > { %5432 = vmatpush1.msk.msra.mxu0 %vm318_vm0, %v811_v55 }
  0xa6   : > { %5590 = vmatprep.subr.mxu0 %v5824_v0 }
  0xa7   : > { %5433 = vmatmul.mubr.msk.f32.vlgmr.msra.gmra.mrb[0].mxu0 %vm314_vm3, %v5430_v56  ;;  %v6022_v59 = vpop.permute.xlu0 %1314  ;;  %v1811_v60 = vpop.permute.xlu1 %1810 }
  0xa8   : > { %5591 = vmatpush3.msk.msra.mxu0 %vm318_vm0, %v815_v58  ;;  %5592 = vmatprep.mubr.msk.f32.mxu0 %vm5834_vm4, %v5824_v0  ;;  %v1323_v61 = vsel %vm1318_vm6, %v6022_v59, %v1317_v52 }
  0xa9   : > { %5600 = vmatprep.subr.mxu0 %v5824_v0 }
  0xab   : > { %5593 = vmatmul.mubr.msk.f32.vlgmr.msra.gmra.mrb[2].mxu0 %vm314_vm3, %v5430_v56  ;;  %v6031_v62 = vpop.permute.xlu0 %1559  ;;  %v1809_v1 = vpop.permute.xlu1 %1808 }
  0xac   : > { %5601 = vmatpush3.msk.msra.mxu0 %vm318_vm0, %v1323_v61  ;;  %5602 = vmatprep.mubr.msk.f32.mxu0 %vm5834_vm4, %v5824_v0  ;;  %v1568_v3 = vsel %vm1563_vm7, %v6031_v62, %v1562_v57 }
  0xad   : > { %5605 = vmatprep.subr.mxu0 %v5824_v0 }
  0xaf   : > { %5603 = vmatmul.mubr.msk.f32.vlgmr.msra.gmra.mrb[4].mxu0 %vm314_vm3, %v6039_v63  ;;  %v805_v4 = vpop.permute.xlu0 %804  ;;  %v1817_v7 = vpop.permute.xlu1 %1816 }
  0xb0   : > { %5606 = vmatpush3.msk.msra.mxu0 %vm318_vm0, %v1568_v3  ;;  %v813_v5 = vsel %vm810_vm5, %v5777_v43, %v805_v4  ;;  %v814_v6 = vsel %vm810_vm5, %v805_v4, %v807_v48  ;;  %5607 = vmatprep.mubr.msk.f32.mxu0 %vm5834_vm4, %v5824_v0 }
  0xb1   : > { %5434 = vmatprep.subr.msk.mxu1 %vm318_vm0, %v814_v6  ;;  %v1047_v6 = vlaneseq }
  0xb2   : > { %5435 = vmatpush1.msk.msra.mxu1 %vm318_vm0, %v813_v5 }
  0xb3   : > { %5436 = vmatmul.mubr.msk.f32.vlgmr.msra.gmra.mrb[0].mxu1 %vm314_vm3, %v5430_v56  ;;  %v5781_v13 = vpop.permute.xlu0 %5780  ;;  %5441 = vmatprep.subr.msk.mxu1 %vm318_vm0, %v5905_v10  ;;  %v2056_v16 = vpop.permute.xlu1 %2055  ;;  %v5467_v10 = vld [vmem:[%s6548_s2 + $0x28] sm:$0xff] }
  0xb4   : > { %v5782_v14 = vunpack.i.l.bf16 %v5781_v13  ;;  %5608 = vmatmul.mubr.msk.f32.vlgmr.msra.gmra.mrb[6].mxu0 %vm314_vm3, %v6055_v12  ;;  %5442 = vmatpush1.msk.msra.mxu1 %vm318_vm0, %v5895_v8  ;;  %v1821_v8 = vsel %vm1820_vm8, %v1809_v1, %v1811_v60 }
  0xb5   : > { %1158 = vmatprep.mubr.f32.mxu1 %v5824_v0  ;;  %1903 = vmatprep.mubr.f32.mxu0 %v5824_v0 }
  0xb6   : > { %v1822_v17 = vsel %vm1820_vm8, %v1811_v60, %v5782_v14  ;;  %5444 = vmatprep.subr.msk.mxu1 %vm318_vm0, %v5899_v9  ;;  %v5783_v9 = vunpack.i.h.bf16 %v5781_v13 }
  0xb7   : > { %5443 = vmatmul.mubr.msk.f32.vlgmr.msra.gmra.mrb[2].mxu1 %vm314_vm3, %v5440_v15  ;;  %v1815_v18 = vpop.permute.xlu0 %1814  ;;  %5468 = vmatprep.subr.msk.mxu0 %vm318_vm0, %v1822_v17  ;;  %v1309_v21 = vpop.permute.xlu1 %1308 }
  0xb8   : > { %v1823_v19 = vsel %vm1820_vm8, %v5782_v14, %v1815_v18  ;;  %v1824_v20 = vsel %vm1820_vm8, %v1815_v18, %v1817_v7  ;;  %5469 = vmatpush1.msk.msra.mxu0 %vm318_vm0, %v1821_v8  ;;  %5445 = vmatpush1.msk.msra.mxu1 %vm318_vm0, %v5890_v2  ;;  %v1825_v2 = vsel %vm1820_vm8, %v1817_v7, %v5783_v9  ;;  %v1048_v14 = vshrl.u32 %v1047_v6, 7 }
  0xb9   : > { %5470 = vmatmul.mubr.msk.f32.vlgmr.msra.gmra.mrb[8].mxu0 %vm314_vm3, %v5467_v10  ;;  %5471 = vmatprep.subr.msk.mxu0 %vm318_vm0, %v1824_v20 }
  0xba   : > { %1229 = vmatprep.mubr.f32.mxu1 %v5824_v0  ;;  %5472 = vmatpush1.msk.msra.mxu0 %vm318_vm0, %v1823_v19 }
  0xbb   : > { %5446 = vmatmul.mubr.msk.f32.vlgmr.msra.gmra.mrb[4].mxu1 %vm314_vm3, %v5440_v15  ;;  %v2054_v22 = vpop.permute.xlu0 %2053  ;;  %1974 = vmatprep.mubr.f32.mxu0 %v5824_v0  ;;  %v2060_v24 = vpop.permute.xlu1 %2059 }
  0xbc   : > { %v2065_v23 = vsel %vm2063_vm9, %v2054_v22, %v2056_v16  ;;  %5610 = vmatprep.subr.mxu0 %v5824_v0  ;;  %5595 = vmatprep.subr.mxu1 %v5824_v0 }
  0xbd   : > { %5473 = vmatmul.mubr.msk.f32.vlgmr.msra.gmra.mrb[10].mxu0 %vm314_vm3, %v5467_v10  ;;  %5596 = vmatpush3.msk.msra.mxu1 %vm318_vm0, %v5909_v11 }
  0xbe   : > { %5611 = vmatpush3.msk.msra.mxu0 %vm318_vm0, %v1825_v2  ;;  %5597 = vmatprep.mubr.msk.f32.mxu1 %vm5834_vm4, %v5824_v0 }
  0xbf   : > { %5476 = vmatprep.subr.msk.mxu0 %vm318_vm0, %v2065_v23  ;;  %5598 = vmatmul.mubr.msk.f32.vlgmr.msra.gmra.mrb[6].mxu1 %vm314_vm3, %v5440_v15  ;;  %v5786_v25 = vpop.permute.xlu0 %5785  ;;  %v2062_v11 = vpop.permute.xlu1 %2061  ;;  %v6177_v15 = vsub.s32 4, %v1048_v14  ;;  %v5410_v23 = vld [vmem:[%s6547_s1 + $0x1] ss:$4 sm:$0x1f] }
  0xc0   : > { %v5788_v26 = vunpack.i.h.bf16 %v5786_v25  ;;  %v5787_v27 = vunpack.i.l.bf16 %v5786_v25  ;;  %5612 = vmatprep.mubr.msk.f32.mxu0 %vm5834_vm4, %v5824_v0  ;;  %1401 = vmatprep.mubr.f32.mxu1 %v5824_v0  ;;  %v2068_v38 = vsel %vm2063_vm9, %v2060_v24, %v2062_v11  ;;  %v6199_v25 = vsub.s32 2, %v1048_v14 }
  0xc1   : > { %5613 = vmatmul.mubr.msk.f32.vlgmr.msra.gmra.mrb[12].mxu0 %vm314_vm3, %v5467_v10 }
  0xc2   : > { %v2064_v28 = vsel %vm2063_vm9, %v5787_v27, %v2054_v22  ;;  %2146 = vmatprep.mubr.f32.mxu0 %v5824_v0  ;;  %v2067_v29 = vsel %vm2063_vm9, %v5788_v26, %v2060_v24  ;;  %v2066_v33 = vsel %vm2063_vm9, %v2056_v16, %v5788_v26  ;;  %v260_v16 = vld [vmem:[%s6547_s1] ss:$4 sm:$0x1f]  ;;  %v6188_v22 = vsub.s32 1, %v1048_v14 }
  0xc3   : > { %v1311_v31 = vpop.permute.xlu0 %1310  ;;  %5477 = vmatpush1.msk.msra.mxu0 %vm318_vm0, %v2064_v28  ;;  %v1556_v34 = vpop.permute.xlu1 %1555  ;;  %v6183_v17 = vrot.slane %v260_v16, %v6177_v15  ;;  %v6201_v26 = vsub.s32 3, %v1048_v14 }
  0xc4   : > { %v1320_v32 = vsel %vm1318_vm6, %v1309_v21, %v1311_v31  ;;  %5479 = vmatprep.subr.msk.mxu0 %vm318_vm0, %v2067_v29  ;;  %v6197_v24 = vrot.slane %v260_v16, %v6188_v22  ;;  %v6207_v29 = vrot.slane %v5410_v23, %v6188_v22 }
  0xc5   : > { %5449 = vmatprep.subr.msk.mxu1 %vm318_vm0, %v1320_v32  ;;  %5478 = vmatmul.mubr.msk.f32.vlgmr.msra.gmra.mrb[8].mxu0 %vm314_vm3, %v5466_v30  ;;  %v6212_v32 = vrot.slane %v260_v16, %v6199_v25 }
  0xc6   : > { %5480 = vmatpush1.msk.msra.mxu0 %vm318_vm0, %v2066_v33  ;;  %2217 = vmatprep.mubr.f32.mxu0 %v5824_v0 }
  0xc7   : > { %v5791_v35 = vpop.permute.xlu0 %5790  ;;  %5615 = vmatprep.subr.mxu0 %v5824_v0  ;;  %v2301_v39 = vpop.permute.xlu1 %2300 }
  0xc8   : > { %v5793_v36 = vunpack.i.h.bf16 %v5791_v35  ;;  %v5792_v37 = vunpack.i.l.bf16 %v5791_v35 }
  0xc9   : > { %5481 = vmatmul.mubr.msk.f32.vlgmr.msra.gmra.mrb[10].mxu0 %vm314_vm3, %v5466_v30 }
  0xca   : > { %5616 = vmatpush3.msk.msra.mxu0 %vm318_vm0, %v2068_v38  ;;  %v1319_v40 = vsel %vm1318_vm6, %v5792_v37, %v1309_v21  ;;  %v1322_v41 = vsel %vm1318_vm6, %v5793_v36, %v6022_v59  ;;  %5617 = vmatprep.mubr.msk.f32.mxu0 %vm5834_vm4, %v5824_v0  ;;  %v1321_v44 = vsel %vm1318_vm6, %v1311_v31, %v5793_v36  ;;  %v6186_v21 = vsub.s32 0, %v1048_v14 }
  0xcb   : > { %v1554_v42 = vpop.permute.xlu0 %1553  ;;  %5450 = vmatpush1.msk.msra.mxu1 %vm318_vm0, %v1319_v40  ;;  %v2297_v45 = vpop.permute.xlu1 %2296 }
  0xcc   : > { %v1565_v43 = vsel %vm1563_vm7, %v1554_v42, %v1556_v34  ;;  %5452 = vmatprep.subr.msk.mxu1 %vm318_vm0, %v1322_v41  ;;  %5451 = vmatmul.mubr.msk.f32.vlgmr.msra.gmra.mrb[2].mxu1 %vm314_vm3, %v6039_v63  ;;  %v6194_v2 = vrot.slane %v260_v16, %v6186_v21  ;;  %v6204_v11 = vrot.slane %v5410_v23, %v6186_v21 }
  0xcd   : > { %5453 = vmatpush1.msk.msra.mxu1 %vm318_vm0, %v1321_v44  ;;  %5618 = vmatmul.mubr.msk.f32.vlgmr.msra.gmra.mrb[12].mxu0 %vm314_vm3, %v5466_v30 }
  0xce   : > { %5458 = vmatprep.subr.msk.mxu1 %vm318_vm0, %v1565_v43  ;;  %1472 = vmatprep.mubr.f32.mxu1 %v5824_v0 }
  0xcf   : > { %v2299_v46 = vpop.permute.xlu0 %2298  ;;  %2391 = vmatprep.mubr.f32.mxu0 %v5824_v0  ;;  %v2303_v52 = vpop.permute.xlu1 %2302 }
  0xd0   : > { %v2309_v47 = vsel %vm2308_vm10, %v2297_v45, %v2299_v46  ;;  %v2310_v48 = vsel %vm2308_vm10, %v2299_v46, %v2301_v39  ;;  %5454 = vmatmul.mubr.msk.f32.vlgmr.msra.gmra.mrb[4].mxu1 %vm314_vm3, %v6039_v63  ;;  %v2311_v59 = vsel %vm2308_vm10, %v2301_v39, %v2303_v52 }
  0xd1   : > { %5485 = vmatprep.subr.msk.mxu0 %vm318_vm0, %v2310_v48  ;;  %1646 = vmatprep.mubr.f32.mxu1 %v5824_v0 }
  0xd2   : > { %5486 = vmatpush1.msk.msra.mxu0 %vm318_vm0, %v2309_v47 }
  0xd3   : > { %v1552_v50 = vpop.permute.xlu0 %1551  ;;  %5487 = vmatmul.mubr.msk.f32.vlgmr.msra.gmra.mrb[8].mxu0 %vm314_vm3, %v5484_v49  ;;  %v2307_v56 = vpop.permute.xlu1 %2306 }
  0xd4   : > { %v1564_v51 = vsel %vm1563_vm7, %v1552_v50, %v1554_v42  ;;  %2462 = vmatprep.mubr.f32.mxu0 %v5824_v0 }
  0xd5   : > { %5459 = vmatpush1.msk.msra.mxu1 %vm318_vm0, %v1564_v51 }
  0xd6   : > { %5460 = vmatmul.mubr.msk.f32.vlgmr.msra.gmra.mrb[2].mxu1 %vm314_vm3, %v6055_v12 }
  0xd7   : > { %v1558_v53 = vpop.permute.xlu0 %1557  ;;  %1717 = vmatprep.mubr.f32.mxu1 %v5824_v0 }
  0xd8   : > { %v1566_v54 = vsel %vm1563_vm7, %v1556_v34, %v1558_v53  ;;  %v1567_v55 = vsel %vm1563_vm7, %v1558_v53, %v6031_v62  ;;  %v6215_v34 = vrot.slane %v260_v16, %v6201_v26  ;;  %v6225_v53 = vrot.slane %v5410_v23, %v6201_v26 }
  0xd9   : > { %5461 = vmatprep.subr.msk.mxu1 %vm318_vm0, %v1567_v55  ;;  %v5835_v16 = vmov 0.125  }
  0xda   : > { %5462 = vmatpush1.msk.msra.mxu1 %vm318_vm0, %v1566_v54 }
  0xdb   : > { %v2305_v57 = vpop.permute.xlu0 %2304  ;;  %5463 = vmatmul.mubr.msk.f32.vlgmr.msra.gmra.mrb[4].mxu1 %vm314_vm3, %v6055_v12 }
  0xdc   : > { %v2312_v58 = vsel %vm2308_vm10, %v2303_v52, %v2305_v57  ;;  %2674 = vmatprep.mubr.f32.mxu1 %v5824_v0  ;;  %v2313_v60 = vsel %vm2308_vm10, %v2305_v57, %v2307_v56 }
  0xdd   : > { %5488 = vmatprep.subr.msk.mxu0 %vm318_vm0, %v2312_v58 }
  0xde   : > { %5489 = vmatpush1.msk.msra.mxu0 %vm318_vm0, %v2311_v59  ;;  %v6229_v59 = vrot.slane %v5410_v23, %v6177_v15 }
  0xdf   : > { %5490 = vmatmul.mubr.msk.f32.vlgmr.msra.gmra.mrb[10].mxu0 %vm314_vm3, %v5484_v49  ;;  %5620 = vmatprep.subr.mxu0 %v5824_v0 }
  0xe0   : > { %5621 = vmatpush3.msk.msra.mxu0 %vm318_vm0, %v2313_v60  ;;  %5622 = vmatprep.mubr.msk.f32.mxu0 %vm5834_vm4, %v5824_v0 }
  0xe3   : > { %5623 = vmatmul.mubr.msk.f32.vlgmr.msra.gmra.mrb[12].mxu0 %vm314_vm3, %v5484_v49  ;;  %v6222_v49 = vrot.slane %v5410_v23, %v6199_v25 }
  0xe4   : > { %3709 = vmatprep.mubr.f32.mxu0 %v5824_v0 }
  0xec   : > { %v2584_v40 = vpop.permute.xlu0 %2583 }
 0x17a   : > { %v895_v61 = vpop.f32.mrb[0].mxu0 }
 0x17b   : > { %v897_v62 = vpop.f32.mrb[1].mxu0  ;;  %v1072_v30 = vmul.f32 %v6194_v2, %v895_v61 }
 0x17c   : > { %v1073_v31 = vmul.f32 %v6197_v24, %v897_v62 }
 0x17e   : > { %v1037_v63 = vpop.f32.mrb[2].mxu0 }
 0x17f   : > { %v5594_v1 = vpop.f32.mrb[3].mxu0  ;;  %v1076_v19 = vmul.f32 %v6183_v17, %v1037_v63 }
 0x182   : > { %v1545_v3 = vpop.f32.mrb[4].mxu0 }
 0x183   : > { %v5604_v4 = vpop.f32.mrb[5].mxu0 }
 0x186   : > { %v966_v5 = vpop.f32.mrb[0].mxu1 }
 0x187   : > { %v968_v7 = vpop.f32.mrb[1].mxu1  ;;  %v1790_v12 = vpop.f32.mrb[6].mxu0  ;;  %v1074_v42 = vmul.f32 %v6212_v32, %v966_v5 }
 0x188   : > { %v5609_v13 = vpop.f32.mrb[7].mxu0  ;;  %v1075_v44 = vmul.f32 %v6215_v34, %v968_v7 }
 0x192   : > { %v1302_v10 = vpop.f32.mrb[6].mxu1 }
 0x193   : > { %v1546_v8 = vadd.f32 %v1545_v3, %v1302_v10  ;;  %v5599_v18 = vpop.f32.mrb[7].mxu1 }
 0x195   : > { %v1798_v20 = vadd.f32 %v1790_v12, %v1546_v8 }
 0x197   : > { %v1803_v9 = vadd.f32 %v1798_v20, %v1076_v19 }
 0x1a6   : > { %v2393_v27 = vpop.f32.mrb[8].mxu0 }
 0x1a7   : > { %v2395_v28 = vpop.f32.mrb[9].mxu0  ;;  %v2570_v35 = vmul.f32 %v6204_v11, %v2393_v27 }
 0x1a8   : > { %v2571_v38 = vmul.f32 %v6207_v29, %v2395_v28 }
 0x1a9   : > { %v1648_v33 = vpop.f32.mrb[2].mxu1 }
 0x1aa   : > { %v1799_v36 = vadd.f32 %v1648_v33, %v1072_v30  ;;  %v1650_v37 = vpop.f32.mrb[3].mxu1 }
 0x1ab   : > { %v1800_v39 = vadd.f32 %v1650_v37, %v1073_v31 }
 0x1ac   : > { %v2575_v41 = vadd.f32 %v2570_v35, %v1799_v36 }
 0x1ad   : > { %v2576_v43 = vadd.f32 %v2571_v38, %v1800_v39  ;;  %v5411_v39 = vld [vmem:[%s6547_s1 + $0x2] ss:$4 sm:$0x1f] }
 0x1ae   : > { %v2586_v45 = vadd.f32 %v2584_v40, %v2575_v41  ;;  %v1719_v46 = vpop.f32.mrb[4].mxu1 }
 0x1af   : > { %v1801_v47 = vadd.f32 %v1719_v46, %v1074_v42  ;;  %v1721_v48 = vpop.f32.mrb[5].mxu1  ;;  %v2587_v50 = vadd.f32 %v2584_v40, %v2576_v43 }
 0x1b0   : > { %v2591_v51 = vmul.f32 0.2, %v2586_v45  ;;  %v1802_v52 = vadd.f32 %v1721_v48, %v1075_v44  ;;  %v2860_v48 = vrot.slane %v5411_v39, %v6188_v22  ;;  %v5508_v22 = vld [vmem:[%s6550_s4 + $0x20] sm:$0xff] }
 0x1b1   : > { %v2592_v54 = vmul.f32 0.2, %v2587_v50 }
 0x1b2   : > { %v2464_v55 = vpop.f32.mrb[10].mxu0  ;;  %v2596_v56 = vmax.f32 %v2586_v45, %v2591_v51  ;;  %v2856_v45 = vrot.slane %v5411_v39, %v6186_v21 }
 0x1b3   : > { %v2572_v57 = vmul.f32 %v6222_v49, %v2464_v55  ;;  %v2466_v58 = vpop.f32.mrb[11].mxu0  ;;  %v2597_v60 = vmax.f32 %v2587_v50, %v2592_v54 }
 0x1b4   : > { %v2573_v61 = vmul.f32 %v6225_v53, %v2466_v58  ;;  %v2601_v4 = vmul.f32 %v2596_v56, %v2596_v56  ;;  %v2864_v58 = vrot.slane %v5411_v39, %v6199_v25  ;;  %v2872_v25 = vrot.slane %v5411_v39, %v6177_v15  ;;  %v5075_v15 = vld [vmem:[%s6551_s5] sm:$0xff] }
 0x1b5   : > { %v2577_v62 = vadd.f32 %v2572_v57, %v1801_v47  ;;  %v2602_v63 = vmul.f32 %v2597_v60, %v2597_v60 }
 0x1b6   : > { %v2578_v1 = vadd.f32 %v2573_v61, %v1802_v52  ;;  %v2535_v3 = vpop.f32.mrb[12].mxu0  ;;  %v2868_v61 = vrot.slane %v5411_v39, %v6201_v26 }
 0x1b7   : > { %v2588_v5 = vadd.f32 %v2584_v40, %v2577_v62  ;;  %v2574_v6 = vmul.f32 %v6229_v59, %v2535_v3  ;;  %v5624_v7 = vpop.f32.mrb[13].mxu0  ;;  %2610 = vmatprep.subr.mxu1 %v2602_v63 }
 0x1b8   : > { %v2589_v12 = vadd.f32 %v2584_v40, %v2578_v1  ;;  %2611 = vmatpush1.msra.mxu1 %v2601_v4 }
 0x1b9   : > { %v2593_v13 = vmul.f32 0.2, %v2588_v5  ;;  %v2579_v14 = vadd.f32 %v2574_v6, %v1803_v9  ;;  %5493 = vmatmul.mubr.msk.f32.vlgmr.msra.gmra.mrb[8].mxu1 %vm2606_vm11, %v5835_v16 }
 0x1ba   : > { %v2594_v10 = vmul.f32 0.2, %v2589_v12  ;;  %2745 = vmatprep.mubr.f32.mxu1 %v5824_v0 }
 0x1bb   : > { %v2598_v8 = vmax.f32 %v2588_v5, %v2593_v13  ;;  %v2590_v18 = vadd.f32 %v2584_v40, %v2579_v14  ;;  %v3858_v14 = vpop.permute.xlu1 %3857 }
 0x1bc   : > { %v2599_v19 = vmax.f32 %v2589_v12, %v2594_v10  ;;  %v2904_v12 = vpop.permute.xlu0 %2903 }
 0x1bd   : > { %v2595_v20 = vmul.f32 0.2, %v2590_v18  ;;  %v2603_v28 = vmul.f32 %v2598_v8, %v2598_v8 }
 0x1be   : > { %v2604_v23 = vmul.f32 %v2599_v19, %v2599_v19 }
 0x1bf   : > { %v6236_v27 = vmax.f32 %v2590_v18, %v2595_v20 }
 0x1c0   : > { %2681 = vmatprep.subr.mxu1 %v2604_v23  ;;  %v3141_v13 = vpop.permute.xlu0 %3140 }
 0x1c1   : > { %2682 = vmatpush1.msra.mxu1 %v2603_v28  ;;  %v2605_v9 = vmul.f32 %v6236_v27, %v6236_v27 }
 0x1c2   : > { %5494 = vmatmul.mubr.msk.f32.vlgmr.msra.gmra.mrb[10].mxu1 %vm2606_vm11, %v5835_v16  ;;  %5625 = vmatprep.subr.mxu1 %v5824_v0 }
 0x1c3   : > { %5626 = vmatpush3.msra.mxu1 %v2605_v9  ;;  %5627 = vmatprep.mubr.msk.f32.mxu1 %vm5834_vm4, %v5824_v0  ;;  %v5496_v9 = vld [vmem:[%s6550_s4 + $0x18] sm:$0xff] }
 0x1c4   : > { %v6350_v10 = vpop.permute.xlu0 %3401 }
 0x1c6   : > { %5628 = vmatmul.mubr.msk.f32.vlgmr.msra.gmra.mrb[12].mxu1 %vm2606_vm11, %v5835_v16 }
 0x1c7   : > { %2992 = vmatprep.mubr.f32.mxu1 %v5824_v0 }
 0x28c   : > { %v2676_v30 = vpop.f32.mrb[8].mxu1 }
 0x28d   : > { %v2677_v31 = vadd.f32 1e-08, %v2676_v30  ;;  %v2678_v33 = vpop.f32.mrb[9].mxu1 }
 0x28e   : > { %v2679_v35 = vadd.f32 1e-08, %v2678_v33 }
 0x28f   : > { %5797 = vrsqrt.f32 %v2677_v31 }
 0x290   : > { %5799 = vrsqrt.f32 %v2679_v35 }
 0x295   : > { %v2747_v36 = vpop.f32.mrb[10].mxu1 }
 0x296   : > { %v2748_v37 = vadd.f32 1e-08, %v2747_v36  ;;  %v2749_v38 = vpop.f32.mrb[11].mxu1  ;;  %v6367_v36 = vld [vmem:[%s6550_s4 + $0x8] sm:$0xff] }
 0x297   : > { %v2750_v40 = vadd.f32 1e-08, %v2749_v38 }
 0x298   : > { %5801 = vrsqrt.f32 %v2748_v37 }
 0x299   : > { %v5798_v41 = vpop.eup %5797  ;;  %5803 = vrsqrt.f32 %v2750_v40  ;;  %v2818_v42 = vpop.f32.mrb[12].mxu1 }
 0x29a   : > { %v5800_v43 = vpop.eup %5799  ;;  %v2830_v44 = vrot.slane %v5798_v41, %v6186_v21  ;;  %v2819_v46 = vadd.f32 1e-08, %v2818_v42  ;;  %v5629_v47 = vpop.f32.mrb[13].mxu1 }
 0x29b   : > { %v2834_v50 = vrot.slane %v5800_v43, %v6186_v21 }
 0x29c   : > { %v2847_v51 = vmul.f32 %v2830_v44, %v2596_v56  ;;  %5805 = vrsqrt.f32 %v2819_v46 }
 0x29d   : > { %v2848_v52 = vmul.f32 %v2834_v50, %v2597_v60 }
 0x29e   : > { %v6255_v54 = vmul.f32 %v2856_v45, %v2847_v51 }
 0x29f   : > { %v6257_v55 = vmul.f32 %v2860_v48, %v2848_v52 }
 0x2a0   : > { %2883 = vst [vmem:[#allocation2 + $0x8] sm:$0xff] %v6255_v54  ;;  %3142 = vrot.lane.b32.xlu0 %v6255_v54, %s5826_s29  ;;  %2905 = vrot.lane.b32.xlu1 %v6255_v54, %s5825_s28 }
 0x2a1   : > { %2884 = vst [vmem:[#allocation2 + $0x10] sm:$0xff] %v6257_v55  ;;  %3645 = vmatprep.subr.mxu0 %v6257_v55 }
 0x2a2   : > { %v5802_v56 = vpop.eup %5801  ;;  %3646 = vmatpush1.msra.mxu0 %v6255_v54 }
 0x2a3   : > { %v5804_v57 = vpop.eup %5803  ;;  %v2838_v60 = vrot.slane %v5802_v56, %v6186_v21  ;;  %5509 = vmatmul.mubr.msk.f32.vlgmr.msra.gmra.mrb[14].mxu0 %vm2606_vm11, %v5508_v22 }
 0x2a4   : > { %v2842_v62 = vrot.slane %v5804_v57, %v6186_v21  ;;  %3391 = vrot.lane.b32.xlu0 %v6255_v54, %s5827_s30  ;;  %3859 = vrot.lane.b32.xlu1 %v6255_v54, %s5828_s7 }
 0x2a5   : > { %v2849_v63 = vmul.f32 %v2838_v60, %v2598_v8  ;;  %3780 = vmatprep.mubr.f32.mxu0 %v5824_v0 }
 0x2a6   : > { %v5806_v1 = vpop.eup %5805  ;;  %v2850_v3 = vmul.f32 %v2842_v62, %v2599_v19  ;;  %v2894_v62 = vld [vmem:[%s6550_s4] sm:$0xff] }
 0x2a7   : > { %v2880_v4 = vmul.f32 %v2864_v58, %v2849_v63  ;;  %v2846_v5 = vrot.slane %v5806_v1, %v6186_v21 }
 0x2a8   : > { %v2881_v6 = vmul.f32 %v2868_v61, %v2850_v3  ;;  %3393 = vrot.lane.b32.xlu0 %v6257_v55, %s5827_s30  ;;  %2907 = vrot.lane.b32.xlu1 %v6257_v55, %s5825_s28 }
 0x2a9   : > { %2885 = vst [vmem:[#allocation2 + $0x18] sm:$0xff] %v2880_v4  ;;  %v2851_v26 = vmul.f32 %v2846_v5, %v6236_v27 }
 0x2aa   : > { %2886 = vst [vmem:[#allocation2 + $0x20] sm:$0xff] %v2881_v6  ;;  %3716 = vmatprep.subr.mxu0 %v2881_v6 }
 0x2ab   : > { %v2882_v7 = vmul.f32 %v2872_v25, %v2851_v26  ;;  %3717 = vmatpush1.msra.mxu0 %v2880_v4 }
 0x2ac   : > { %3861 = vrot.lane.b32.xlu0 %v6257_v55, %s5828_s7  ;;  %3144 = vrot.lane.b32.xlu1 %v6257_v55, %s5826_s29 }
 0x2ad   : > { %2887 = vst [vmem:[#allocation2 + $0x28] sm:$0xff] %v2882_v7  ;;  %5645 = vmatprep.subr.mxu0 %v5824_v0  ;;  %5510 = vmatmul.mubr.msk.f32.vlgmr.msra.gmra.mrb[16].mxu0 %vm2606_vm11, %v5508_v22 }
 0x2ae   : > { %5646 = vmatpush3.msra.mxu0 %v2882_v7  ;;  %5647 = vmatprep.mubr.msk.f32.mxu0 %vm5834_vm4, %v5824_v0 }
 0x2b0   : > { %3863 = vrot.lane.b32.xlu0 %v2880_v4, %s5828_s7  ;;  %2909 = vrot.lane.b32.xlu1 %v2880_v4, %s5825_s28 }
 0x2b1   : > { %5648 = vmatmul.mubr.msk.f32.vlgmr.msra.gmra.mrb[18].mxu0 %vm2606_vm11, %v5508_v22 }
 0x2b2   : > { %3946 = vmatprep.mubr.f32.mxu0 %v5824_v0 }
 0x2b4   : > { %2911 = vrot.lane.b32.xlu0 %v2881_v6, %s5825_s28  ;;  %3146 = vrot.lane.b32.xlu1 %v2880_v4, %s5826_s29 }
 0x2b8   : > { %3148 = vrot.lane.b32.xlu0 %v2881_v6, %s5826_s29  ;;  %3395 = vrot.lane.b32.xlu1 %v2880_v4, %s5827_s30 }
 0x2bc   : > { %4098 = vrot.lane.b32.xlu0 %v6257_v55, %s5829_s8  ;;  %3397 = vrot.lane.b32.xlu1 %v2881_v6, %s5827_s30 }
 0x2c0   : > { %4096 = vrot.lane.b32.xlu0 %v6255_v54, %s5829_s8  ;;  %3865 = vrot.lane.b32.xlu1 %v2881_v6, %s5828_s7 }
 0x2c4   : > { %4351 = vrot.lane.b32.xlu0 %v2880_v4, %s5830_s9  ;;  %2913 = vrot.lane.b32.xlu1 %v2882_v7, %s5825_s28 }
 0x2c8   : > { %4102 = vrot.lane.b32.xlu0 %v2881_v6, %s5829_s8  ;;  %4106 = vrot.lane.b32.xlu1 %v5824_v0, %s5829_s8 }
 0x2cc   : > { %3399 = vrot.lane.b32.xlu0 %v2882_v7, %s5827_s30  ;;  %4100 = vrot.lane.b32.xlu1 %v2880_v4, %s5829_s8 }
 0x2d0   : > { %4586 = vrot.lane.b32.xlu0 %v6255_v54, %s5831_s10  ;;  %3150 = vrot.lane.b32.xlu1 %v2882_v7, %s5826_s29 }
 0x2d4   : > { %4104 = vrot.lane.b32.xlu0 %v2882_v7, %s5829_s8  ;;  %4349 = vrot.lane.b32.xlu1 %v6257_v55, %s5830_s9 }
 0x2d8   : > { %4584 = vrot.lane.b32.xlu0 %v5824_v0, %s5831_s10  ;;  %4347 = vrot.lane.b32.xlu1 %v6255_v54, %s5830_s9 }
 0x2dc   : > { %4355 = vrot.lane.b32.xlu0 %v2882_v7, %s5830_s9  ;;  %4353 = vrot.lane.b32.xlu1 %v2881_v6, %s5830_s9 }
 0x2e0   : > { %4592 = vrot.lane.b32.xlu0 %v2881_v6, %s5831_s10  ;;  %3867 = vrot.lane.b32.xlu1 %v2882_v7, %s5828_s7 }
 0x2e4   : > { %4825 = vrot.lane.b32.xlu0 %v6257_v55, %s5832_s11  ;;  %4357 = vrot.lane.b32.xlu1 %v5824_v0, %s5830_s9  ;;  %v6346_v0 = vld [vmem:[#allocation2] sm:$0xff] }
 0x2e8   : > { %4823 = vrot.lane.b32.xlu0 %v6255_v54, %s5832_s11  ;;  %4588 = vrot.lane.b32.xlu1 %v6257_v55, %s5831_s10 }
 0x2ec   : > { %4831 = vrot.lane.b32.xlu0 %v2882_v7, %s5832_s11  ;;  %4590 = vrot.lane.b32.xlu1 %v2880_v4, %s5831_s10 }
 0x2f0   : > { %5078 = vperm.xlu0 %5794, %v5075_v15   ;;  %4827 = vrot.lane.b32.xlu1 %v2880_v4, %s5832_s11 }
 0x2f4   : > { %4594 = vrot.lane.b32.xlu1 %v2882_v7, %s5831_s10 }
 0x2f8   : > { %4829 = vrot.lane.b32.xlu1 %v2881_v6, %s5832_s11 }
 0x2fc   : > { %4833 = vrot.lane.b32.xlu1 %v6346_v0, %s5832_s11 }
 0x312   : > { %v3143_v8 = vpop.permute.xlu0 %3142  ;;  %v2906_v18 = vpop.permute.xlu1 %2905 }
 0x313   : > { %v2915_v30 = vsel %vm308_vm1, %v2904_v12, %v2906_v18  ;;  %v3152_v57 = vsel %vm553_vm2, %v3141_v13, %v3143_v8  ;;  %v5503_v13 = vld [vmem:[%s6550_s4 + $0x30] sm:$0xff] }
 0x316   : > { %v6352_v19 = vpop.permute.xlu0 %3391  ;;  %v3860_v20 = vpop.permute.xlu1 %3859 }
 0x317   : > { %v3869_v37 = vsel %vm1318_vm6, %v3858_v14, %v3860_v20 }
 0x31a   : > { %v6354_v23 = vpop.permute.xlu0 %3393  ;;  %v2908_v27 = vpop.permute.xlu1 %2907 }
 0x31b   : > { %v2916_v28 = vsel %vm308_vm1, %v2906_v18, %v2908_v27  ;;  %v3403_v26 = vsel %vm810_vm5, %v6352_v19, %v6354_v23 }
 0x31c   : > { %2928 = vmatprep.subr.mxu1 %v2916_v28 }
 0x31d   : > { %2929 = vmatpush1.msra.mxu1 %v2915_v30  ;;  %v5515_v30 = vld [vmem:[%s6550_s4 + $0x38] sm:$0xff] }
 0x31e   : > { %v3862_v31 = vpop.permute.xlu0 %3861  ;;  %v3145_v33 = vpop.permute.xlu1 %3144  ;;  %5497 = vmatmul.mubr.msk.f32.vlgmr.msra.gmra.mrb[14].mxu1 %vm2606_vm11, %v5496_v9 }
 0x31f   : > { %v3870_v35 = vsel %vm1318_vm6, %v3860_v20, %v3862_v31  ;;  %3063 = vmatprep.mubr.f32.mxu1 %v6346_v0  ;;  %v3153_v56 = vsel %vm553_vm2, %v3143_v8, %v3145_v33 }
 0x320   : > { %3882 = vmatprep.subr.mxu0 %v3870_v35 }
 0x321   : > { %3883 = vmatpush1.msra.mxu0 %v3869_v37 }
 0x322   : > { %v3864_v38 = vpop.permute.xlu0 %3863  ;;  %v2910_v39 = vpop.permute.xlu1 %2909  ;;  %5512 = vmatmul.mubr.msk.f32.vlgmr.msra.gmra.mrb[14].mxu0 %vm2606_vm11, %v6367_v36 }
 0x323   : > { %4017 = vmatprep.mubr.f32.mxu0 %v6346_v0  ;;  %v2917_v43 = vsel %vm308_vm1, %v2908_v27, %v2910_v39  ;;  %v3871_v52 = vsel %vm1318_vm6, %v3862_v31, %v3864_v38 }
 0x326   : > { %v2912_v40 = vpop.permute.xlu0 %2911  ;;  %v3147_v41 = vpop.permute.xlu1 %3146 }
 0x327   : > { %v2918_v42 = vsel %vm308_vm1, %v2910_v39, %v2912_v40  ;;  %v3154_v63 = vsel %vm553_vm2, %v3145_v33, %v3147_v41 }
 0x328   : > { %2999 = vmatprep.subr.mxu1 %v2918_v42 }
 0x329   : > { %3000 = vmatpush1.msra.mxu1 %v2917_v43 }
 0x32a   : > { %v3149_v44 = vpop.permute.xlu0 %3148  ;;  %v3396_v45 = vpop.permute.xlu1 %3395  ;;  %5498 = vmatmul.mubr.msk.f32.vlgmr.msra.gmra.mrb[16].mxu1 %vm2606_vm11, %v5496_v9  ;;  %5630 = vmatprep.subr.mxu1 %v6346_v0 }
 0x32b   : > { %5632 = vmatprep.mubr.msk.f32.mxu1 %vm5834_vm4, %v6346_v0  ;;  %v3155_v61 = vsel %vm553_vm2, %v3147_v41, %v3149_v44  ;;  %v3404_v6 = vsel %vm810_vm5, %v6354_v23, %v3396_v45  ;;  %v5520_v41 = vld [vmem:[%s6550_s4 + $0x28] sm:$0xff] }
 0x32e   : > { %v6379_v46 = vpop.permute.xlu0 %4098  ;;  %v3398_v47 = vpop.permute.xlu1 %3397 }
 0x32f   : > { %v3405_v14 = vsel %vm810_vm5, %v3396_v45, %v3398_v47 }
 0x332   : > { %v6381_v48 = vpop.permute.xlu0 %4096  ;;  %v6383_v50 = vpop.permute.xlu1 %3865 }
 0x333   : > { %v3872_v51 = vsel %vm1318_vm6, %v3864_v38, %v6383_v50  ;;  %v4108_v33 = vsel %vm1563_vm7, %v6381_v48, %v6379_v46 }
 0x334   : > { %3953 = vmatprep.subr.mxu0 %v3872_v51  ;;  %v5519_v51 = vld [vmem:[%s6550_s4 + $0x10] sm:$0xff] }
 0x335   : > { %3954 = vmatpush1.msra.mxu0 %v3871_v52 }
 0x336   : > { %v6388_v54 = vpop.permute.xlu0 %4351  ;;  %v2914_v55 = vpop.permute.xlu1 %2913  ;;  %5513 = vmatmul.mubr.msk.f32.vlgmr.msra.gmra.mrb[16].mxu0 %vm2606_vm11, %v6367_v36  ;;  %5650 = vmatprep.subr.mxu0 %v6346_v0 }
 0x337   : > { %v2919_v22 = vsel %vm308_vm1, %v2912_v40, %v2914_v55  ;;  %5652 = vmatprep.mubr.msk.f32.mxu0 %vm5834_vm4, %v6346_v0 }
 0x338   : > { %5631 = vmatpush3.msra.mxu1 %v2919_v22 }
 0x339   : > { %5633 = vmatmul.mubr.msk.f32.vlgmr.msra.gmra.mrb[18].mxu1 %vm2606_vm11, %v5496_v9  ;;  %3165 = vmatprep.subr.mxu1 %v3153_v56 }
 0x33a   : > { %v6399_v58 = vpop.permute.xlu0 %4102  ;;  %3166 = vmatpush1.msra.mxu1 %v3152_v57  ;;  %v4107_v60 = vpop.permute.xlu1 %4106  ;;  %3229 = vmatprep.mubr.f32.mxu1 %v6346_v0 }
 0x33b   : > { %3236 = vmatprep.subr.mxu1 %v3155_v61 }
 0x33d   : > { %5500 = vmatmul.mubr.msk.f32.vlgmr.msra.gmra.mrb[14].mxu1 %vm2606_vm11, %v2894_v62 }
 0x33e   : > { %3237 = vmatpush1.msra.mxu1 %v3154_v63  ;;  %v3400_v1 = vpop.permute.xlu0 %3399  ;;  %v4101_v3 = vpop.permute.xlu1 %4100  ;;  %3300 = vmatprep.mubr.f32.mxu1 %v6346_v0 }
 0x33f   : > { %5635 = vmatprep.subr.mxu1 %v6346_v0  ;;  %v3406_v12 = vsel %vm810_vm5, %v3398_v47, %v3400_v1  ;;  %v3407_v19 = vsel %vm810_vm5, %v3400_v1, %v6350_v10  ;;  %v4109_v31 = vsel %vm1563_vm7, %v6379_v46, %v4101_v3 }
 0x341   : > { %5501 = vmatmul.mubr.msk.f32.vlgmr.msra.gmra.mrb[16].mxu1 %vm2606_vm11, %v2894_v62 }
 0x342   : > { %v6411_v25 = vpop.permute.xlu0 %4586  ;;  %v3151_v4 = vpop.permute.xlu1 %3150  ;;  %5637 = vmatprep.mubr.msk.f32.mxu1 %vm5834_vm4, %v6346_v0 }
 0x343   : > { %v3156_v5 = vsel %vm553_vm2, %v3149_v44, %v3151_v4 }
 0x344   : > { %5636 = vmatpush3.msra.mxu1 %v3156_v5 }
 0x345   : > { %5638 = vmatmul.mubr.msk.f32.vlgmr.msra.gmra.mrb[18].mxu1 %vm2606_vm11, %v2894_v62  ;;  %3416 = vmatprep.subr.mxu1 %v3404_v6 }
 0x346   : > { %v4105_v7 = vpop.permute.xlu0 %4104  ;;  %3417 = vmatpush1.msra.mxu1 %v3403_v26  ;;  %v4350_v15 = vpop.permute.xlu1 %4349  ;;  %3480 = vmatprep.mubr.f32.mxu1 %v6346_v0 }
 0x347   : > { %3487 = vmatprep.subr.mxu1 %v3406_v12  ;;  %v4112_v23 = vsel %vm1563_vm7, %v4105_v7, %v4107_v60  ;;  %v4360_v28 = vsel %vm1820_vm8, %v4350_v15, %v6388_v54  ;;  %v4111_v38 = vsel %vm1563_vm7, %v6399_v58, %v4105_v7  ;;  %v5527_v60 = vld [vmem:[%s6550_s4 + $0x40] sm:$0xff] }
 0x349   : > { %5504 = vmatmul.mubr.msk.f32.vlgmr.msra.gmra.mrb[14].mxu1 %vm2606_vm11, %v5503_v13 }
 0x34a   : > { %3488 = vmatpush1.msra.mxu1 %v3405_v14  ;;  %v4348_v8 = vpop.permute.xlu1 %4347  ;;  %3551 = vmatprep.mubr.f32.mxu1 %v6346_v0  ;;  %v4585_v18 = vpop.permute.xlu0 %4584 }
 0x34b   : > { %5640 = vmatprep.subr.mxu1 %v6346_v0  ;;  %v4359_v35 = vsel %vm1820_vm8, %v4348_v8, %v4350_v15  ;;  %v4596_v47 = vsel %vm2063_vm9, %v4585_v18, %v6411_v25 }
 0x34d   : > { %5505 = vmatmul.mubr.msk.f32.vlgmr.msra.gmra.mrb[16].mxu1 %vm2606_vm11, %v5503_v13 }
 0x34e   : > { %5641 = vmatpush3.msra.mxu1 %v3407_v19  ;;  %v4354_v20 = vpop.permute.xlu1 %4353  ;;  %5642 = vmatprep.mubr.msk.f32.mxu1 %vm5834_vm4, %v6346_v0  ;;  %v4356_v27 = vpop.permute.xlu0 %4355 }
 0x34f   : > { %5655 = vmatprep.subr.mxu1 %v6346_v0  ;;  %v4362_v40 = vsel %vm1820_vm8, %v4354_v20, %v4356_v27  ;;  %v4361_v42 = vsel %vm1820_vm8, %v6388_v54, %v4354_v20 }
 0x351   : > { %5643 = vmatmul.mubr.msk.f32.vlgmr.msra.gmra.mrb[18].mxu1 %vm2606_vm11, %v5503_v13 }
 0x352   : > { %5656 = vmatpush3.msra.mxu1 %v4112_v23  ;;  %v3868_v9 = vpop.permute.xlu1 %3867  ;;  %5657 = vmatprep.mubr.msk.f32.mxu1 %vm5834_vm4, %v6346_v0  ;;  %v4593_v39 = vpop.permute.xlu0 %4592 }
 0x353   : > { %4372 = vmatprep.subr.mxu1 %v4360_v28  ;;  %v3873_v10 = vsel %vm1318_vm6, %v6383_v50, %v3868_v9 }
 0x354   : > { %5651 = vmatpush3.msra.mxu0 %v3873_v10 }
 0x355   : > { %5653 = vmatmul.mubr.msk.f32.vlgmr.msra.gmra.mrb[20].mxu0 %vm2606_vm11, %v6367_v36  ;;  %4121 = vmatprep.subr.mxu0 %v4109_v31  ;;  %v4110_v36 = vsel %vm1563_vm7, %v4101_v3, %v6399_v58 }
 0x356   : > { %5658 = vmatmul.mubr.msk.f32.vlgmr.msra.gmra.mrb[20].mxu1 %vm2606_vm11, %v5515_v30  ;;  %v4358_v37 = vpop.permute.xlu1 %4357  ;;  %4122 = vmatpush1.msra.mxu0 %v4108_v33  ;;  %v4826_v45 = vpop.permute.xlu0 %4825 }
 0x357   : > { %4373 = vmatpush1.msra.mxu1 %v4359_v35  ;;  %4192 = vmatprep.subr.mxu0 %v4111_v38  ;;  %v4363_v46 = vsel %vm1820_vm8, %v4356_v27, %v4358_v37 }
 0x358   : > { %4443 = vmatprep.subr.mxu1 %v4362_v40  ;;  %4185 = vmatprep.mubr.f32.mxu0 %v6346_v0 }
 0x359   : > { %4436 = vmatprep.mubr.f32.mxu1 %v6346_v0  ;;  %5516 = vmatmul.mubr.msk.f32.vlgmr.msra.gmra.mrb[14].mxu0 %vm2606_vm11, %v5515_v30 }
 0x35a   : > { %4193 = vmatpush1.msra.mxu0 %v4110_v36  ;;  %5521 = vmatmul.mubr.msk.f32.vlgmr.msra.gmra.mrb[22].mxu1 %vm2606_vm11, %v5520_v41  ;;  %v4589_v43 = vpop.permute.xlu1 %4588  ;;  %v4824_v55 = vpop.permute.xlu0 %4823 }
 0x35b   : > { %4444 = vmatpush1.msra.mxu1 %v4361_v42  ;;  %4256 = vmatprep.mubr.f32.mxu0 %v6346_v0  ;;  %v4597_v44 = vsel %vm2063_vm9, %v6411_v25, %v4589_v43  ;;  %v4835_v56 = vsel %vm2308_vm10, %v4824_v55, %v4826_v45 }
 0x35c   : > { %4507 = vmatprep.mubr.f32.mxu1 %v6346_v0  ;;  %5660 = vmatprep.subr.mxu0 %v6346_v0 }
 0x35d   : > { %4609 = vmatprep.subr.mxu1 %v4597_v44  ;;  %5517 = vmatmul.mubr.msk.f32.vlgmr.msra.gmra.mrb[16].mxu0 %vm2606_vm11, %v5515_v30 }
 0x35e   : > { %5522 = vmatmul.mubr.msk.f32.vlgmr.msra.gmra.mrb[24].mxu1 %vm2606_vm11, %v5520_v41  ;;  %5661 = vmatpush3.msra.mxu0 %v4363_v46  ;;  %v4591_v48 = vpop.permute.xlu1 %4590  ;;  %v4832_v61 = vpop.permute.xlu0 %4831 }
 0x35f   : > { %4610 = vmatpush1.msra.mxu1 %v4596_v47  ;;  %5662 = vmatprep.mubr.msk.f32.mxu0 %vm5834_vm4, %v6346_v0  ;;  %v4599_v50 = vsel %vm2063_vm9, %v4591_v48, %v4593_v39  ;;  %v4598_v52 = vsel %vm2063_vm9, %v4589_v43, %v4591_v48 }
 0x360   : > { %4673 = vmatprep.mubr.f32.mxu1 %v6346_v0  ;;  %4680 = vmatprep.subr.mxu1 %v4599_v50 }
 0x361   : > { %5663 = vmatmul.mubr.msk.f32.vlgmr.msra.gmra.mrb[22].mxu0 %vm2606_vm11, %v5520_v41  ;;  %5665 = vmatprep.subr.mxu0 %v6346_v0 }
 0x362   : > { %5524 = vmatmul.mubr.msk.f32.vlgmr.msra.gmra.mrb[22].mxu1 %vm2606_vm11, %v5519_v51  ;;  %v4828_v54 = vpop.permute.xlu1 %4827  ;;  %5667 = vmatprep.mubr.msk.f32.mxu0 %vm5834_vm4, %v6346_v0 }
 0x363   : > { %4681 = vmatpush1.msra.mxu1 %v4598_v52  ;;  %4744 = vmatprep.mubr.f32.mxu1 %v6346_v0  ;;  %v4836_v22 = vsel %vm2308_vm10, %v4826_v45, %v4828_v54 }
 0x364   : > { %4848 = vmatprep.subr.mxu1 %v4836_v22 }
 0x366   : > { %5525 = vmatmul.mubr.msk.f32.vlgmr.msra.gmra.mrb[24].mxu1 %vm2606_vm11, %v5519_v51  ;;  %v4595_v57 = vpop.permute.xlu1 %4594 }
 0x367   : > { %4849 = vmatpush1.msra.mxu1 %v4835_v56  ;;  %v4600_v58 = vsel %vm2063_vm9, %v4593_v39, %v4595_v57  ;;  %4912 = vmatprep.mubr.f32.mxu1 %v6346_v0 }
 0x368   : > { %5666 = vmatpush3.msra.mxu0 %v4600_v58 }
 0x369   : > { %5668 = vmatmul.mubr.msk.f32.vlgmr.msra.gmra.mrb[22].mxu0 %vm2606_vm11, %v5519_v51  ;;  %5670 = vmatprep.subr.mxu0 %v6346_v0 }
 0x36a   : > { %5528 = vmatmul.mubr.msk.f32.vlgmr.msra.gmra.mrb[22].mxu1 %vm2606_vm11, %v5527_v60  ;;  %v4830_v62 = vpop.permute.xlu1 %4829  ;;  %5672 = vmatprep.mubr.msk.f32.mxu0 %vm5834_vm4, %v6346_v0 }
 0x36b   : > { %v4837_v63 = vsel %vm2308_vm10, %v4828_v54, %v4830_v62  ;;  %v4838_v1 = vsel %vm2308_vm10, %v4830_v62, %v4832_v61  ;;  %4983 = vmatprep.mubr.f32.mxu1 %v6346_v0 }
 0x36c   : > { %4919 = vmatprep.subr.mxu1 %v4838_v1 }
 0x36d   : > { %4920 = vmatpush1.msra.mxu1 %v4837_v63 }
 0x36e   : > { %5529 = vmatmul.mubr.msk.f32.vlgmr.msra.gmra.mrb[24].mxu1 %vm2606_vm11, %v5527_v60  ;;  %v4834_v3 = vpop.permute.xlu1 %4833  ;;  %5675 = vmatprep.subr.mxu1 %v6346_v0 }
 0x36f   : > { %v4839_v25 = vsel %vm2308_vm10, %v4832_v61, %v4834_v3  ;;  %5677 = vmatprep.mubr.msk.f32.mxu1 %vm5834_vm4, %v6346_v0  ;;  %v5079_v44 = vpop.permute.xlu0 %5078 }
 0x370   : > { %5671 = vmatpush3.msra.mxu0 %v4839_v25 }
 0x371   : > { %5673 = vmatmul.mubr.msk.f32.vlgmr.msra.gmra.mrb[22].mxu0 %vm2606_vm11, %v5527_v60 }
 0x372   : > { %5165 = vmatprep.mubr.f32.mxu0 %v6346_v0 }
 0x384   : > { %v3853_v4 = vpop.f32.mrb[18].mxu0 }
 0x385   : > { %v5649_v5 = vpop.f32.mrb[19].mxu0 }
 0x41c   : > { %v3482_v6 = vpop.f32.mrb[14].mxu1 }
 0x41d   : > { %v3484_v26 = vpop.f32.mrb[15].mxu1  ;;  %v3633_v23 = vmul.f32 %v3482_v6, %v6194_v2 }
 0x41e   : > { %v3634_v9 = vmul.f32 %v3484_v26, %v6197_v24 }
 0x420   : > { %v3553_v7 = vpop.f32.mrb[16].mxu1 }
 0x421   : > { %v3555_v15 = vpop.f32.mrb[17].mxu1  ;;  %v3635_v37 = vmul.f32 %v3553_v7, %v6212_v32 }
 0x422   : > { %v3636_v38 = vmul.f32 %v3555_v15, %v6215_v34 }
 0x424   : > { %v3624_v12 = vpop.f32.mrb[18].mxu1 }
 0x425   : > { %v5644_v13 = vpop.f32.mrb[19].mxu1  ;;  %v3637_v27 = vmul.f32 %v3624_v12, %v6183_v17 }
 0x428   : > { %v4090_v14 = vpop.f32.mrb[20].mxu0 }
 0x429   : > { %v4091_v8 = vadd.f32 %v4090_v14, %v3853_v4  ;;  %v4329_v18 = vpop.f32.mrb[20].mxu1  ;;  %v5654_v19 = vpop.f32.mrb[21].mxu0 }
 0x42a   : > { %v5659_v20 = vpop.f32.mrb[21].mxu1 }
 0x42b   : > { %v4337_v28 = vadd.f32 %v4329_v18, %v4091_v8 }
 0x42c   : > { %v4187_v10 = vpop.f32.mrb[14].mxu0 }
 0x42d   : > { %v4342_v30 = vadd.f32 %v4337_v28, %v3637_v27  ;;  %v4338_v31 = vadd.f32 %v4187_v10, %v3633_v23  ;;  %v4189_v33 = vpop.f32.mrb[15].mxu0 }
 0x42e   : > { %v4339_v35 = vadd.f32 %v4189_v33, %v3634_v9 }
 0x430   : > { %v4258_v39 = vpop.f32.mrb[16].mxu0 }
 0x431   : > { %v4340_v40 = vadd.f32 %v4258_v39, %v3635_v37  ;;  %v4260_v41 = vpop.f32.mrb[17].mxu0 }
 0x432   : > { %v4341_v36 = vadd.f32 %v4260_v41, %v3636_v38 }
 0x43d   : > { %v4914_v42 = vpop.f32.mrb[22].mxu1 }
 0x43e   : > { %v5065_v2 = vmul.f32 %v4914_v42, %v6204_v11  ;;  %v4916_v17 = vpop.f32.mrb[23].mxu1 }
 0x43f   : > { %v5066_v43 = vmul.f32 %v4916_v17, %v6207_v29 }
 0x440   : > { %v5070_v24 = vadd.f32 %v5065_v2, %v4338_v31 }
 0x441   : > { %v5071_v45 = vadd.f32 %v5066_v43, %v4339_v35  ;;  %v4985_v46 = vpop.f32.mrb[24].mxu1 }
 0x442   : > { %v5081_v47 = vadd.f32 %v5079_v44, %v5070_v24  ;;  %v5067_v48 = vmul.f32 %v4985_v46, %v6222_v49  ;;  %v4987_v32 = vpop.f32.mrb[25].mxu1 }
 0x443   : > { %v5082_v50 = vadd.f32 %v5079_v44, %v5071_v45  ;;  %v5068_v34 = vmul.f32 %v4987_v32, %v6225_v53 }
 0x444   : > { %v5086_v51 = vmul.f32 0.2, %v5081_v47  ;;  %v5072_v52 = vadd.f32 %v5067_v48, %v4340_v40  ;;  %v5056_v54 = vpop.f32.mrb[22].mxu0 }
 0x445   : > { %v5087_v55 = vmul.f32 0.2, %v5082_v50  ;;  %v5073_v22 = vadd.f32 %v5068_v34, %v4341_v36  ;;  %v5069_v11 = vmul.f32 %v5056_v54, %v6229_v59  ;;  %v5674_v56 = vpop.f32.mrb[23].mxu0 }
 0x446   : > { %v5091_v29 = vmax.f32 %v5081_v47, %v5086_v51  ;;  %v5083_v57 = vadd.f32 %v5079_v44, %v5072_v52 }
 0x447   : > { %v5084_v58 = vadd.f32 %v5079_v44, %v5073_v22  ;;  %v5074_v60 = vadd.f32 %v5069_v11, %v4342_v30  ;;  %v5092_v61 = vmax.f32 %v5082_v50, %v5087_v55 }
 0x448   : > { %v5088_v62 = vmul.f32 0.2, %v5083_v57  ;;  %v5096_v25 = vmul.f32 %v5091_v29, %v5091_v29 }
 0x449   : > { %v5089_v63 = vmul.f32 0.2, %v5084_v58  ;;  %v5085_v49 = vadd.f32 %v5079_v44, %v5074_v60  ;;  %v5097_v1 = vmul.f32 %v5092_v61, %v5092_v61 }
 0x44a   : > { %v5093_v3 = vmax.f32 %v5083_v57, %v5088_v62 }
 0x44b   : > { %v5090_v53 = vmul.f32 0.2, %v5085_v49  ;;  %5101 = vmatprep.subr.mxu0 %v5097_v1  ;;  %v5094_v4 = vmax.f32 %v5084_v58, %v5089_v63 }
 0x44c   : > { %5102 = vmatpush1.msra.mxu0 %v5096_v25  ;;  %v5098_v6 = vmul.f32 %v5093_v3, %v5093_v3 }
 0x44d   : > { %v5095_v5 = vmax.f32 %v5085_v49, %v5090_v53  ;;  %5531 = vmatmul.mubr.msk.f32.vlgmr.msra.gmra.mrb[24].mxu0 %vm2606_vm11, %v5835_v16  ;;  %v5099_v59 = vmul.f32 %v5094_v4, %v5094_v4 }
 0x44e   : > { %5236 = vmatprep.mubr.f32.mxu0 %v6346_v0 }
 0x44f   : > { %5172 = vmatprep.subr.mxu0 %v5099_v59  ;;  %v5100_v26 = vmul.f32 %v5095_v5, %v5095_v5 }
 0x450   : > { %5173 = vmatpush1.msra.mxu0 %v5098_v6 }
 0x451   : > { %5532 = vmatmul.mubr.msk.f32.vlgmr.msra.gmra.mrb[26].mxu0 %vm2606_vm11, %v5835_v16  ;;  %5676 = vmatpush3.msra.mxu1 %v5100_v26 }
 0x452   : > { %5678 = vmatmul.mubr.msk.f32.vlgmr.msra.gmra.mrb[26].mxu1 %vm2606_vm11, %v5835_v16 }
 0x520   : > { %v5167_v7 = vpop.f32.mrb[24].mxu0 }
 0x521   : > { %v5168_v15 = vadd.f32 1e-08, %v5167_v7  ;;  %v5169_v12 = vpop.f32.mrb[25].mxu0 }
 0x522   : > { %v5170_v13 = vadd.f32 1e-08, %v5169_v12 }
 0x523   : > { %5807 = vrsqrt.f32 %v5168_v15 }
 0x524   : > { %5809 = vrsqrt.f32 %v5170_v13  ;;  %v5238_v14 = vpop.f32.mrb[26].mxu0 }
 0x525   : > { %v5239_v8 = vpop.f32.mrb[27].mxu0  ;;  %v5308_v0 = vpop.f32.mrb[26].mxu1 }
 0x526   : > { %v5240_v18 = vadd.f32 1e-08, %v5239_v8  ;;  %v5309_v19 = vadd.f32 1e-08, %v5308_v0  ;;  %v5679_v20 = vpop.f32.mrb[27].mxu1 }
 0x528   : > { %5811 = vrsqrt.f32 %v5240_v18 }
 0x529   : > { %5813 = vrsqrt.f32 %v5309_v19 }
 0x52d   : > { %v5808_v23 = vpop.eup %5807 }
 0x52e   : > { %v5810_v27 = vpop.eup %5809  ;;  %v5319_v28 = vrot.slane %v5808_v23, %v6186_v21 }
 0x52f   : > { %v5323_v16 = vrot.slane %v5810_v27, %v6186_v21 }
 0x530   : > { %v5332_v9 = vmul.f32 %v5319_v28, %v5091_v29 }
 0x531   : > { %v5333_v10 = vmul.f32 %v5323_v16, %v5092_v61 }
 0x532   : > { %v5812_v30 = vpop.eup %5811  ;;  %5336 = vst [vmem:[%s258_s27] sm:$0xff] %v5332_v9 }
 0x533   : > { %v5814_v31 = vpop.eup %5813  ;;  %5337 = vst [vmem:[%s258_s27 + $0x8] sm:$0xff] %v5333_v10  ;;  %v5327_v33 = vrot.slane %v5812_v30, %v6186_v21 }
 0x534   : > { %v5331_v35 = vrot.slane %v5814_v31, %v6186_v21 }
 0x535   : > { %v5334_v37 = vmul.f32 %v5327_v33, %v5094_v4 }
 0x536   : > { %v5335_v38 = vmul.f32 %v5331_v35, %v5095_v5 }
 0x537   : > { %5534 = vst [vmem:[%s258_s27 + $0x10] sm:$0xff] %v5334_v37 }
 0x538   : > { %5535 = vst [vmem:[%s258_s27 + $0x18] sm:$0xff] %v5335_v38 }
 0x539 PF: > { %s16_s21 = sadd.s32 1, %s5822_s21  }
 0x53a   : > { %p13_p4 = scmp.ge.s32.totalorder %s16_s21, 4  }
 0x53c   :  { %15 = sbr.rel (!%p13_p4) target bundleno = 1 (0x1), region = 94 }

</bundles_post_ra>
